<compile_context>
chip_gen: v7x
topology: tpu7x:2x2x1
jax: 0.10.0
libtpu: 0.0.40
codegen_flags: <defaults>
</compile_context>

<pallas_src>
import functools

import numpy as np
import jax
import jax.numpy as jnp
from jax.experimental import pallas as pl
from jax.experimental.pallas import tpu as pltpu

LEAKY_SLOPE = 0.01   # F.leaky_relu default
BN_EPS = 1e-5        # nn.BatchNorm2d default
CP = 128             # padded channel width (lane-dense)
K1_PAD = 32          # conv1 im2col K (= 3*3*3 = 27) padded for alignment


def _leaky(y):
    return jnp.maximum(y, LEAKY_SLOPE * y)


# ----------------------------------------------------------------------------
# Kernel 1: stem conv (3 -> ch, 3x3, stride 2) as one bf16 matmul + leaky_relu.
# ----------------------------------------------------------------------------
def _conv1_kernel(p_ref, w_ref, b_ref, o_ref):
    y = jnp.dot(p_ref[...], w_ref[...], preferred_element_type=jnp.float32)
    y = _leaky(y + b_ref[...])
    o_ref[...] = y.astype(o_ref.dtype)


# ----------------------------------------------------------------------------
# Kernel 2: fused 3x3 conv block.
#   y = conv3x3(x) + bias ; y = leaky(y)
#   [y = Sel @ y]                (stride-2 decimation via 0/1 selection matmul)
#   [y = y*scale + shift]        (training-mode BN folded to one FMA)
#   [y = y + residual]
#   [y = y @ Wproj + bproj]      (fused 1x1 conv6)
# The conv is 9 shifted-window matmuls accumulated in an f32 VMEM scratch:
# dx shifts arrive as three pre-shifted refs, dy shifts are tile-aligned row
# slices inside the kernel (im2col never hits HBM).
# ----------------------------------------------------------------------------
def _conv_block_kernel(n_img, h, w, do_sel, do_bn, do_res, do_proj, *refs):
    it = iter(refs)
    x_refs = (next(it), next(it), next(it))   # dx = 0, 1, 2 shifted copies (bf16)
    w_ref = next(it)                          # [9, CP, CP] bf16 tap matrices
    b_ref = next(it)                          # [1, CP] f32
    sel_ref = next(it) if do_sel else None    # [M_out, M_full] bf16 (0/1)
    g_ref = next(it) if do_bn else None       # [1, CP] f32
    be_ref = next(it) if do_bn else None      # [1, CP] f32
    r_ref = next(it) if do_res else None      # [M_out, CP] bf16
    wp_ref = next(it) if do_proj else None    # [CP, CP] bf16
    bp_ref = next(it) if do_proj else None    # [1, CP] f32
    o_ref = next(it)
    acc_ref = next(it)                        # VMEM scratch [M_full, CP] f32

    hw = h * w            # output pixels per image (full resolution)
    hpw = (h + 2) * w     # rows per image in the shifted/padded inputs

    # 9-tap shifted-window accumulation on the MXU (bf16 x bf16 -> f32).
    for n in range(n_img):
        for dy in range(3):
            base = n * hpw + dy * w
            for dx in range(3):
                t = 3 * dy + dx
                chunk = x_refs[dx][base:base + hw, :]
                d = jnp.dot(chunk, w_ref[t], preferred_element_type=jnp.float32)
                if t == 0:
                    acc_ref[n * hw:(n + 1) * hw, :] = d
                else:
                    acc_ref[n * hw:(n + 1) * hw, :] += d

    y = _leaky(acc_ref[...] + b_ref[...])

    if do_sel:
        # stride-2 decimation as a selection matmul (keeps everything aligned).
        y = jnp.dot(sel_ref[...].astype(jnp.float32), y,
                    preferred_element_type=jnp.float32)

    if do_bn:
        # training-mode BatchNorm2d: biased batch stats over all pixels,
        # folded into a single per-channel FMA.
        mean = jnp.mean(y, axis=0, keepdims=True)
        var = jnp.mean(y * y, axis=0, keepdims=True) - mean * mean
        scale = g_ref[...] * jax.lax.rsqrt(var + BN_EPS)
        shift = be_ref[...] - mean * scale
        y = y * scale + shift

    if do_res:
        y = y + r_ref[...].astype(jnp.float32)

    if do_proj:   # fused 1x1 conv (conv6)
        y = jnp.dot(y.astype(jnp.bfloat16), wp_ref[...],
                    preferred_element_type=jnp.float32) + bp_ref[...]

    o_ref[...] = y.astype(o_ref.dtype)


# ----------------------------------------------------------------------------
# pallas_call helper (full-array VMEM blocks; problem fits VMEM at these sizes)
# ----------------------------------------------------------------------------
def _full_block_call(kernel, inputs, out_shape, scratch_shapes, flops,
                     bytes_accessed):
    in_specs = [pl.BlockSpec(a.shape, lambda i, nd=a.ndim: (0,) * nd)
                for a in inputs]
    return pl.pallas_call(
        kernel,
        out_shape=out_shape,
        grid=(1,),
        in_specs=in_specs,
        out_specs=pl.BlockSpec(out_shape.shape,
                               lambda i: (0,) * len(out_shape.shape)),
        scratch_shapes=scratch_shapes,
        compiler_params=pltpu.CompilerParams(
            dimension_semantics=("arbitrary",),
            vmem_limit_bytes=32 * 1024 * 1024,
        ),
        cost_estimate=pl.CostEstimate(flops=int(flops), transcendentals=0,
                                      bytes_accessed=int(bytes_accessed)),
    )(*inputs)


# ----------------------------------------------------------------------------
# Layer wrappers (JAX glue is data movement only: pad / shift / reshape / cast)
# ----------------------------------------------------------------------------
def conv1_layer(x_nhwc, w1, b1):
    """3 -> ch stem conv (3x3, stride 2, pad 1) + leaky.  Tiny K, wrapper im2col."""
    N, H, W, Cin = x_nhwc.shape
    Ho, Wo = H // 2, W // 2
    xp = jnp.pad(x_nhwc, ((0, 0), (1, 1), (1, 1), (0, 0)))
    cols = [xp[:, dy:dy + 2 * Ho:2, dx:dx + 2 * Wo:2, :]
            for dy in range(3) for dx in range(3)]
    patches = jnp.concatenate(cols, axis=-1).reshape(N * Ho * Wo, 9 * Cin)
    patches = jnp.pad(patches, ((0, 0), (0, K1_PAD - 9 * Cin))).astype(jnp.bfloat16)

    m = N * Ho * Wo
    out_shape = jax.ShapeDtypeStruct((m, CP), jnp.bfloat16)
    flops = 2 * m * K1_PAD * CP
    bytes_accessed = patches.size * 2 + w1.size * 2 + b1.size * 4 + m * CP * 2
    return _full_block_call(_conv1_kernel, [patches, w1, b1], out_shape, (),
                            flops, bytes_accessed)


def conv3x3_block(x_img, w_taps, bias, gamma=None, beta=None, residual=None,
                  sel=None, w_proj=None, b_proj=None, out_dtype=jnp.bfloat16):
    """Fused 3x3 conv (+leaky +[decimate] +[BN] +[residual] +[1x1 proj]).

    x_img: [N, H, W, CP] bf16 (channel-padded).  Returns flat [M_out, CP].
    """
    N, H, W, C = x_img.shape
    xp = jnp.pad(x_img, ((0, 0), (1, 1), (1, 1), (0, 0)))
    # Three W-shifted copies (1x activation each, instead of a 9x im2col).
    xs = [xp[:, :, dx:dx + W, :].reshape(N * (H + 2) * W, C) for dx in range(3)]

    m_full = N * H * W
    m_out = m_full if sel is None else sel.shape[0]

    inputs = list(xs) + [w_taps, bias]
    if sel is not None:
        inputs.append(sel)
    if gamma is not None:
        inputs += [gamma, beta]
    if residual is not None:
        inputs.append(residual)
    if w_proj is not None:
        inputs += [w_proj, b_proj]

    kernel = functools.partial(
        _conv_block_kernel, N, H, W,
        sel is not None, gamma is not None, residual is not None,
        w_proj is not None)

    flops = 2 * 9 * m_full * C * C
    if sel is not None:
        flops += 2 * m_out * m_full * C
    if w_proj is not None:
        flops += 2 * m_out * C * C
    bytes_accessed = sum(int(np.prod(a.shape)) * a.dtype.itemsize for a in inputs)
    bytes_accessed += m_out * C * jnp.dtype(out_dtype).itemsize

    out_shape = jax.ShapeDtypeStruct((m_out, C), out_dtype)
    scratch = [pltpu.VMEM((m_full, C), jnp.float32)]
    return _full_block_call(kernel, inputs, out_shape, scratch, flops,
                            bytes_accessed)


def make_stride2_select(n, h, w):
    """0/1 decimation matrix [n*(h//2)*(w//2), n*h*w]: keeps even rows/cols."""
    ho, wo = h // 2, w // 2
    m_out = n * ho * wo
    j = np.arange(m_out)
    img = j // (ho * wo)
    yy = (j // wo) % ho
    xx = j % wo
    src = img * h * w + (2 * yy) * w + 2 * xx
    sel = np.zeros((m_out, n * h * w), np.float32)
    sel[j, src] = 1.0
    return jnp.asarray(sel, dtype=jnp.bfloat16)


# ----------------------------------------------------------------------------
# Parameter init (deterministic, synthetic) + packing into padded bf16 layouts.
# ----------------------------------------------------------------------------
def _pack_vec(v, cp=CP):
    v = jnp.asarray(v, jnp.float32)
    return jnp.pad(v, (0, cp - v.shape[0])).reshape(1, cp)


def _pack_conv3x3(w, cp=CP):
    kh, kw, cin, cout = w.shape
    taps = jnp.zeros((kh * kw, cp, cp), jnp.float32)
    taps = taps.at[:, :cin, :cout].set(w.reshape(kh * kw, cin, cout))
    return taps.astype(jnp.bfloat16)


def init_params(key, ch, csize):
    assert 2 * ch <= CP and csize <= CP
    ks = jax.random.split(key, 12)

    def conv_w(k, kh, kw, cin, cout):
        fan_in = kh * kw * cin
        return jax.random.normal(k, (kh, kw, cin, cout), jnp.float32) / jnp.sqrt(
            float(fan_in))

    w1 = conv_w(ks[0], 3, 3, 3, ch)
    w2 = conv_w(ks[2], 3, 3, ch, ch)
    w3 = conv_w(ks[4], 3, 3, ch, ch)
    w4 = conv_w(ks[6], 3, 3, ch, 2 * ch)
    w5 = conv_w(ks[8], 3, 3, 2 * ch, 2 * ch)
    w6 = conv_w(ks[10], 1, 1, 2 * ch, csize)

    p = {}
    # conv1 as an im2col matmul weight: [27 -> K1_PAD, CP]
    p["w1"] = jnp.pad(w1.reshape(27, ch),
                      ((0, K1_PAD - 27), (0, CP - ch))).astype(jnp.bfloat16)
    p["b1"] = _pack_vec(0.01 * jax.random.normal(ks[1], (ch,)))
    p["w2"] = _pack_conv3x3(w2)
    p["b2"] = _pack_vec(0.01 * jax.random.normal(ks[3], (ch,)))
    p["w3"] = _pack_conv3x3(w3)
    p["b3"] = _pack_vec(0.01 * jax.random.normal(ks[5], (ch,)))
    p["w4"] = _pack_conv3x3(w4)
    p["b4"] = _pack_vec(0.01 * jax.random.normal(ks[7], (2 * ch,)))
    p["w5"] = _pack_conv3x3(w5)
    p["b5"] = _pack_vec(0.01 * jax.random.normal(ks[9], (2 * ch,)))
    p["w6"] = jnp.pad(w6.reshape(2 * ch, csize),
                      ((0, CP - 2 * ch), (0, CP - csize))).astype(jnp.bfloat16)
    p["b6"] = _pack_vec(0.01 * jax.random.normal(ks[11], (csize,)))
    # BatchNorm affine params at PyTorch init (gamma=1, beta=0), zero-padded.
    for name, c in (("2", ch), ("3", ch), ("4", 2 * ch), ("5", 2 * ch)):
        p["g" + name] = _pack_vec(jnp.ones((c,), jnp.float32))
        p["be" + name] = _pack_vec(jnp.zeros((c,), jnp.float32))
    return p


# ----------------------------------------------------------------------------
# Forward pass (mirrors EncoderNetwork2.forward)
# ----------------------------------------------------------------------------
def encoder_forward(params, x_nchw, ch, csize):
    x = jnp.transpose(x_nchw, (0, 2, 3, 1)).astype(jnp.float32)     # -> NHWC
    N, H, W, _ = x.shape
    H1, W1 = H // 2, W // 2
    H3, W3 = H1 // 2, W1 // 2

    # out = leaky(conv1(x))                        (3 -> ch, 3x3, s2, p1)
    o1 = conv1_layer(x, params["w1"], params["b1"])                  # [N*H1*W1, CP]
    o1_img = o1.reshape(N, H1, W1, CP)

    # out = bn2(leaky(conv2(out))) + out           (ch -> ch, 3x3, s1, p1)
    o2 = conv3x3_block(o1_img, params["w2"], params["b2"],
                       gamma=params["g2"], beta=params["be2"], residual=o1)
    o2_img = o2.reshape(N, H1, W1, CP)

    # out = bn3(leaky(conv3(out)))                 (ch -> ch, 3x3, s2, p1)
    sel = make_stride2_select(N, H1, W1)
    o3 = conv3x3_block(o2_img, params["w3"], params["b3"],
                       gamma=params["g3"], beta=params["be3"], sel=sel)
    o3_img = o3.reshape(N, H3, W3, CP)

    # out = bn4(leaky(conv4(out)))                 (ch -> 2ch, 3x3, s1, p1)
    o4 = conv3x3_block(o3_img, params["w4"], params["b4"],
                       gamma=params["g4"], beta=params["be4"])
    o4_img = o4.reshape(N, H3, W3, CP)

    # out = bn5(leaky(conv5(out))) + out ; out = conv6(out)   (one fused call)
    o6 = conv3x3_block(o4_img, params["w5"], params["b5"],
                       gamma=params["g5"], beta=params["be5"], residual=o4,
                       w_proj=params["w6"], b_proj=params["b6"],
                       out_dtype=jnp.float32)                        # [N*H3*W3, CP]

    out = o6[:, :csize].reshape(N, H3, W3, csize)
    return jnp.transpose(out, (0, 3, 1, 2))                          # -> NCHW


if __name__ == "__main__":
    ch, csize = 64, 128          # EncoderNetwork2 defaults (already lane-friendly)
    key = jax.random.PRNGKey(0)
    k_param, k_x = jax.random.split(key)

    params = init_params(k_param, ch, csize)
    # 64x64 input: keeps every bf16 ref slice (16,128)-tile aligned inside the
    # kernels (W/2 = 32, W/4 = 16), and stays small (2x3x64x64).
    x = jax.random.normal(k_x, (2, 3, 64, 64), jnp.float32)          # NCHW

    out = encoder_forward(params, x, ch, csize)
    out = jax.block_until_ready(out)

    assert out.shape == (2, csize, 16, 16), out.shape
    assert jnp.all(jnp.isfinite(out))
    print("KERNEL_OK")
</pallas_src>

<mosaic_0001>
module attributes {stable_mosaic.version = 11 : i64} {
  func.func @_conv1_kernel(%arg0: i32, %arg1: memref<2048x32xbf16, #tpu.memory_space<vmem>>, %arg2: memref<32x128xbf16, #tpu.memory_space<vmem>>, %arg3: memref<1x128xf32, #tpu.memory_space<vmem>>, %arg4: memref<2048x128xbf16, #tpu.memory_space<vmem>>) attributes {dimension_semantics = [#tpu.dimension_semantics<arbitrary>], iteration_bounds = array<i64: 1>, scalar_prefetch = 0 : i64, scratch_operands = 0 : i64, tpu.core_type = #tpu.core_type<tc>, window_params = [{pipeline_mode = #tpu.pipeline_mode<synchronous>, transform_indices = @transform_0, window_bounds = array<i64: 2048, 32>}, {pipeline_mode = #tpu.pipeline_mode<synchronous>, transform_indices = @transform_1, window_bounds = array<i64: 32, 128>}, {pipeline_mode = #tpu.pipeline_mode<synchronous>, transform_indices = @transform_2, window_bounds = array<i64: 1, 128>}, {pipeline_mode = #tpu.pipeline_mode<synchronous>, transform_indices = @transform_3, window_bounds = array<i64: 2048, 128>}]} {
    %c0 = arith.constant 0 : index
    %c0_0 = arith.constant 0 : index
    %0 = vector.load %arg1[%c0, %c0_0] : memref<2048x32xbf16, #tpu.memory_space<vmem>>, vector<2048x32xbf16>
    %c0_1 = arith.constant 0 : index
    %c0_2 = arith.constant 0 : index
    %1 = vector.load %arg2[%c0_1, %c0_2] : memref<32x128xbf16, #tpu.memory_space<vmem>>, vector<32x128xbf16>
    %cst = arith.constant dense<0.000000e+00> : vector<2048x128xf32>
    %2 = tpu.matmul %0, %1, %cst {dimension_numbers = #tpu.dot_dimension_numbers<[1], [0], [0], [1], [0, 0, 1, 1], [], []>} : vector<2048x32xbf16>, vector<32x128xbf16>, vector<2048x128xf32> -> vector<2048x128xf32>
    %c0_3 = arith.constant 0 : index
    %c0_4 = arith.constant 0 : index
    %3 = vector.load %arg3[%c0_3, %c0_4] : memref<1x128xf32, #tpu.memory_space<vmem>>, vector<1x128xf32>
    %4 = vector.broadcast %3 : vector<1x128xf32> to vector<2048x128xf32>
    %5 = arith.addf %2, %4 : vector<2048x128xf32>
    %cst_5 = arith.constant 0.00999999977 : f32
    %6 = vector.broadcast %cst_5 : f32 to vector<2048x128xf32>
    %7 = arith.mulf %6, %5 : vector<2048x128xf32>
    %8 = arith.maximumf %5, %7 : vector<2048x128xf32>
    %9 = arith.truncf %8 : vector<2048x128xf32> to vector<2048x128xbf16>
    %c0_6 = arith.constant 0 : index
    %c0_7 = arith.constant 0 : index
    %10 = vector.load %arg4[%c0_6, %c0_7] : memref<2048x128xbf16, #tpu.memory_space<vmem>>, vector<2048x128xbf16>
    tpu.vector_store %arg4[%c0_6, %c0_7], %9 {strides = array<i32>} : memref<2048x128xbf16, #tpu.memory_space<vmem>>, vector<2048x128xbf16>,
    return
  }
  func.func @transform_0(%arg0: i32) -> (i32, i32) {
    %c0_i32 = arith.constant 0 : i32
    %c0_i32_0 = arith.constant 0 : i32
    %c0_i32_1 = arith.constant 0 : i32
    return %c0_i32, %c0_i32_0 : i32, i32
  }
  func.func @transform_1(%arg0: i32) -> (i32, i32) {
    %c0_i32 = arith.constant 0 : i32
    %c0_i32_0 = arith.constant 0 : i32
    %c0_i32_1 = arith.constant 0 : i32
    return %c0_i32, %c0_i32_0 : i32, i32
  }
  func.func @transform_2(%arg0: i32) -> (i32, i32) {
    %c0_i32 = arith.constant 0 : i32
    %c0_i32_0 = arith.constant 0 : i32
    %c0_i32_1 = arith.constant 0 : i32
    return %c0_i32, %c0_i32_0 : i32, i32
  }
  func.func @transform_3(%arg0: i32) -> (i32, i32) {
    %c0_i32 = arith.constant 0 : i32
    %c0_i32_0 = arith.constant 0 : i32
    %c0_i32_1 = arith.constant 0 : i32
    return %c0_i32, %c0_i32_0 : i32, i32
  }
}

</mosaic_0001>

<bundles_post_ra>
// kernel: tpu_custom_call.1
= control target key start
LH: loop header
LB: loop body
LE: loop exit
PB: predicated region body
PF: predicated region fallthrough
CT: control target
= control target key end

     0   :  { %vm935_vm0 = vcmask 261120   ;;  %s7100_s0 = inlined_call_operand.vmem [shape: bf16[2048,32], index: 0, kind: input, shape index: {}]   ;;  %s7101_s1 = inlined_call_operand.vmem [shape: bf16[32,128], index: 1, kind: input, shape index: {}]   ;;  %s7102_s2 = inlined_call_operand.vmem [shape: f32[1,128], index: 2, kind: input, shape index: {}]   ;;  %s7103_s3 = inlined_call_operand.hbm [shape: bf16[2048,128], index: 3, kind: output, shape index: {}]  }
   0x1   :  { %v6120_v0 = vld [vmem:[%s7101_s1] sm:$0xff]   ;;  %v6121_v1 = vld [vmem:[%s7101_s1 + $0x8] sm:$0xff]   ;;  %v6126_v6 = vld [vmem:[%s7100_s0 + $0x10] sm:$0xff]  }
   0x2   :  { %5853 = vmatprep.subr.bf16.mxu0 %v6120_v0  ;;  %6113 = vmatprep.subr.bf16.mxu1 %v6120_v0  ;;  %v6122_v2 = vld [vmem:[%s7100_s0] sm:$0xff]   ;;  %v6124_v4 = vld [vmem:[%s7100_s0 + $0x8] sm:$0xff]   ;;  %v6127_v7 = vld [vmem:[%s7100_s0 + $0x210] sm:$0xff]  }
   0x3   :  { %5854 = vmatpush3.bf16.msra.mxu0 %v6120_v0  ;;  %6115 = vmatpush3.bf16.msra.mxu1 %v6120_v0  ;;  %v6123_v3 = vld [vmem:[%s7100_s0 + $0x200] sm:$0xff]   ;;  %v6125_v5 = vld [vmem:[%s7100_s0 + $0x208] sm:$0xff]   ;;  %v6128_v8 = vld [vmem:[%s7100_s0 + $0x18] sm:$0xff]  }
   0x4   :  { %5855 = vmatprep.subr.bf16.mxu0 %v6121_v1  ;;  %6114 = vmatprep.subr.bf16.mxu1 %v6121_v1  ;;  %v6129_v9 = vld [vmem:[%s7100_s0 + $0x218] sm:$0xff]   ;;  %v6130_v10 = vld [vmem:[%s7100_s0 + $0x20] sm:$0xff]   ;;  %v6132_v12 = vld [vmem:[%s7100_s0 + $0x28] sm:$0xff]  }
   0x5   :  { %5857 = vmatprep.mubr.msk.bf16.mxu0 %vm935_vm0, %v6122_v2  ;;  %5985 = vmatprep.mubr.msk.bf16.mxu1 %vm935_vm0, %v6123_v3  ;;  %v6131_v11 = vld [vmem:[%s7100_s0 + $0x220] sm:$0xff]   ;;  %v6133_v13 = vld [vmem:[%s7100_s0 + $0x228] sm:$0xff]   ;;  %v6134_v14 = vld [vmem:[%s7100_s0 + $0x30] sm:$0xff]  }
   0x6   :  { %v6135_v15 = vld [vmem:[%s7100_s0 + $0x230] sm:$0xff]   ;;  %v6136_v16 = vld [vmem:[%s7100_s0 + $0x38] sm:$0xff]   ;;  %v6138_v18 = vld [vmem:[%s7100_s0 + $0x40] sm:$0xff]  }
   0x7   :  { %5856 = vmatpush3.bf16.msra.mxu0 %v6121_v1  ;;  %6116 = vmatpush3.bf16.msra.mxu1 %v6121_v1  ;;  %v6137_v17 = vld [vmem:[%s7100_s0 + $0x238] sm:$0xff]   ;;  %v6139_v19 = vld [vmem:[%s7100_s0 + $0x240] sm:$0xff]   ;;  %v6140_v20 = vld [vmem:[%s7100_s0 + $0x48] sm:$0xff]  }
   0x8   :  { %v6141_v21 = vld [vmem:[%s7100_s0 + $0x248] sm:$0xff]   ;;  %v6142_v22 = vld [vmem:[%s7100_s0 + $0x50] sm:$0xff]   ;;  %v6144_v24 = vld [vmem:[%s7100_s0 + $0x58] sm:$0xff]  }
   0x9   :  { %v6143_v23 = vld [vmem:[%s7100_s0 + $0x250] sm:$0xff]   ;;  %v6145_v25 = vld [vmem:[%s7100_s0 + $0x258] sm:$0xff]   ;;  %v6146_v26 = vld [vmem:[%s7100_s0 + $0x60] sm:$0xff]  }
   0xa   :  { %5858 = vmatmul.mubr.msk.bf16.vlgmr.msra.gmra.mrb[0].mxu0 %vm935_vm0, %v6124_v4  ;;  %5986 = vmatmul.mubr.msk.bf16.vlgmr.msra.gmra.mrb[0].mxu1 %vm935_vm0, %v6125_v5  ;;  %v6147_v27 = vld [vmem:[%s7100_s0 + $0x260] sm:$0xff]   ;;  %v6148_v28 = vld [vmem:[%s7100_s0 + $0x68] sm:$0xff]   ;;  %v6150_v30 = vld [vmem:[%s7100_s0 + $0x70] sm:$0xff]  }
   0xb   :  { %5861 = vmatprep.mubr.msk.bf16.mxu0 %vm935_vm0, %v6126_v6  ;;  %5989 = vmatprep.mubr.msk.bf16.mxu1 %vm935_vm0, %v6127_v7  ;;  %v6149_v29 = vld [vmem:[%s7100_s0 + $0x268] sm:$0xff]   ;;  %v6151_v31 = vld [vmem:[%s7100_s0 + $0x270] sm:$0xff]   ;;  %v6152_v32 = vld [vmem:[%s7100_s0 + $0x78] sm:$0xff]  }
   0xc   :  { %v6153_v33 = vld [vmem:[%s7100_s0 + $0x278] sm:$0xff]   ;;  %v6154_v34 = vld [vmem:[%s7100_s0 + $0x80] sm:$0xff]   ;;  %v6156_v36 = vld [vmem:[%s7100_s0 + $0x88] sm:$0xff]  }
   0xd   :  { %v6155_v35 = vld [vmem:[%s7100_s0 + $0x280] sm:$0xff]   ;;  %v6157_v37 = vld [vmem:[%s7100_s0 + $0x288] sm:$0xff]   ;;  %v6158_v38 = vld [vmem:[%s7100_s0 + $0x90] sm:$0xff]  }
   0xe   :  { %v6159_v39 = vld [vmem:[%s7100_s0 + $0x290] sm:$0xff]   ;;  %v6160_v40 = vld [vmem:[%s7100_s0 + $0x98] sm:$0xff]   ;;  %v6162_v42 = vld [vmem:[%s7100_s0 + $0xa0] sm:$0xff]  }
   0xf   :  { %v6161_v41 = vld [vmem:[%s7100_s0 + $0x298] sm:$0xff]   ;;  %v6163_v43 = vld [vmem:[%s7100_s0 + $0x2a0] sm:$0xff]   ;;  %v6164_v44 = vld [vmem:[%s7100_s0 + $0xa8] sm:$0xff]  }
  0x10   :  { %v6165_v45 = vld [vmem:[%s7100_s0 + $0x2a8] sm:$0xff]   ;;  %v6166_v46 = vld [vmem:[%s7100_s0 + $0xb0] sm:$0xff]   ;;  %v6168_v48 = vld [vmem:[%s7100_s0 + $0xb8] sm:$0xff]  }
  0x11   :  { %v6167_v47 = vld [vmem:[%s7100_s0 + $0x2b0] sm:$0xff]   ;;  %v6169_v49 = vld [vmem:[%s7100_s0 + $0x2b8] sm:$0xff]   ;;  %v6170_v50 = vld [vmem:[%s7100_s0 + $0xc0] sm:$0xff]  }
  0x12   :  { %5862 = vmatmul.mubr.msk.bf16.gmra.mrb[4].mxu0 %vm935_vm0, %v6128_v8  ;;  %5990 = vmatmul.mubr.msk.bf16.gmra.mrb[4].mxu1 %vm935_vm0, %v6129_v9  ;;  %v6171_v51 = vld [vmem:[%s7100_s0 + $0x2c0] sm:$0xff]   ;;  %v6172_v52 = vld [vmem:[%s7100_s0 + $0xc8] sm:$0xff]   ;;  %v6174_v54 = vld [vmem:[%s7100_s0 + $0xd0] sm:$0xff]  }
  0x13   :  { %5865 = vmatprep.mubr.msk.bf16.mxu0 %vm935_vm0, %v6130_v10  ;;  %5993 = vmatprep.mubr.msk.bf16.mxu1 %vm935_vm0, %v6131_v11  ;;  %v6173_v53 = vld [vmem:[%s7100_s0 + $0x2c8] sm:$0xff]   ;;  %v6175_v55 = vld [vmem:[%s7100_s0 + $0x2d0] sm:$0xff]   ;;  %v6176_v56 = vld [vmem:[%s7100_s0 + $0xd8] sm:$0xff]  }
  0x14   :  { %v6177_v57 = vld [vmem:[%s7100_s0 + $0x2d8] sm:$0xff]   ;;  %v6178_v58 = vld [vmem:[%s7100_s0 + $0xe0] sm:$0xff]   ;;  %v6180_v60 = vld [vmem:[%s7100_s0 + $0xe8] sm:$0xff]  }
  0x15   :  { %v6179_v59 = vld [vmem:[%s7100_s0 + $0x2e0] sm:$0xff]   ;;  %v6181_v61 = vld [vmem:[%s7100_s0 + $0x2e8] sm:$0xff]   ;;  %v6182_v62 = vld [vmem:[%s7100_s0 + $0xf0] sm:$0xff]  }
  0x16   :  { %v6183_v63 = vld [vmem:[%s7100_s0 + $0x2f0] sm:$0xff]   ;;  %v6184_v0 = vld [vmem:[%s7100_s0 + $0xf8] sm:$0xff]   ;;  %v6186_v2 = vld [vmem:[%s7100_s0 + $0x100] sm:$0xff]  }
  0x17   :  { %v6185_v1 = vld [vmem:[%s7100_s0 + $0x2f8] sm:$0xff]   ;;  %v6187_v3 = vld [vmem:[%s7100_s0 + $0x300] sm:$0xff]  }
  0x1a   :  { %5866 = vmatmul.mubr.msk.bf16.gmra.mrb[8].mxu0 %vm935_vm0, %v6132_v12  ;;  %5994 = vmatmul.mubr.msk.bf16.gmra.mrb[8].mxu1 %vm935_vm0, %v6133_v13 }
  0x1b   :  { %5869 = vmatprep.mubr.msk.bf16.mxu0 %vm935_vm0, %v6134_v14  ;;  %5997 = vmatprep.mubr.msk.bf16.mxu1 %vm935_vm0, %v6135_v15 }
  0x22   :  { %5870 = vmatmul.mubr.msk.bf16.gmra.mrb[12].mxu0 %vm935_vm0, %v6136_v16  ;;  %5998 = vmatmul.mubr.msk.bf16.gmra.mrb[12].mxu1 %vm935_vm0, %v6137_v17 }
  0x23   :  { %5873 = vmatprep.mubr.msk.bf16.mxu0 %vm935_vm0, %v6138_v18  ;;  %6001 = vmatprep.mubr.msk.bf16.mxu1 %vm935_vm0, %v6139_v19 }
  0x2a   :  { %5874 = vmatmul.mubr.msk.bf16.gmra.mrb[16].mxu0 %vm935_vm0, %v6140_v20  ;;  %6002 = vmatmul.mubr.msk.bf16.gmra.mrb[16].mxu1 %vm935_vm0, %v6141_v21 }
  0x2b   :  { %5877 = vmatprep.mubr.msk.bf16.mxu0 %vm935_vm0, %v6142_v22  ;;  %6005 = vmatprep.mubr.msk.bf16.mxu1 %vm935_vm0, %v6143_v23 }
  0x32   :  { %5878 = vmatmul.mubr.msk.bf16.gmra.mrb[20].mxu0 %vm935_vm0, %v6144_v24  ;;  %6006 = vmatmul.mubr.msk.bf16.gmra.mrb[20].mxu1 %vm935_vm0, %v6145_v25 }
  0x33   :  { %5881 = vmatprep.mubr.msk.bf16.mxu0 %vm935_vm0, %v6146_v26  ;;  %6009 = vmatprep.mubr.msk.bf16.mxu1 %vm935_vm0, %v6147_v27 }
  0x3a   :  { %5882 = vmatmul.mubr.msk.bf16.gmra.mrb[24].mxu0 %vm935_vm0, %v6148_v28  ;;  %6010 = vmatmul.mubr.msk.bf16.gmra.mrb[24].mxu1 %vm935_vm0, %v6149_v29 }
  0x3b   :  { %5885 = vmatprep.mubr.msk.bf16.mxu0 %vm935_vm0, %v6150_v30  ;;  %6013 = vmatprep.mubr.msk.bf16.mxu1 %vm935_vm0, %v6151_v31 }
  0x42   :  { %5886 = vmatmul.mubr.msk.bf16.gmra.mrb[28].mxu0 %vm935_vm0, %v6152_v32  ;;  %6014 = vmatmul.mubr.msk.bf16.gmra.mrb[28].mxu1 %vm935_vm0, %v6153_v33 }
  0x43   :  { %5889 = vmatprep.mubr.msk.bf16.mxu0 %vm935_vm0, %v6154_v34  ;;  %6017 = vmatprep.mubr.msk.bf16.mxu1 %vm935_vm0, %v6155_v35 }
  0x4a   :  { %5890 = vmatmul.mubr.msk.bf16.gmra.mrb[32].mxu0 %vm935_vm0, %v6156_v36  ;;  %6018 = vmatmul.mubr.msk.bf16.gmra.mrb[32].mxu1 %vm935_vm0, %v6157_v37 }
  0x4b   :  { %5893 = vmatprep.mubr.msk.bf16.mxu0 %vm935_vm0, %v6158_v38  ;;  %6021 = vmatprep.mubr.msk.bf16.mxu1 %vm935_vm0, %v6159_v39 }
  0x52   :  { %5894 = vmatmul.mubr.msk.bf16.gmra.mrb[36].mxu0 %vm935_vm0, %v6160_v40  ;;  %6022 = vmatmul.mubr.msk.bf16.gmra.mrb[36].mxu1 %vm935_vm0, %v6161_v41 }
  0x53   :  { %5897 = vmatprep.mubr.msk.bf16.mxu0 %vm935_vm0, %v6162_v42  ;;  %6025 = vmatprep.mubr.msk.bf16.mxu1 %vm935_vm0, %v6163_v43 }
  0x5a   :  { %5898 = vmatmul.mubr.msk.bf16.gmra.mrb[40].mxu0 %vm935_vm0, %v6164_v44  ;;  %6026 = vmatmul.mubr.msk.bf16.gmra.mrb[40].mxu1 %vm935_vm0, %v6165_v45 }
  0x5b   :  { %5901 = vmatprep.mubr.msk.bf16.mxu0 %vm935_vm0, %v6166_v46  ;;  %6029 = vmatprep.mubr.msk.bf16.mxu1 %vm935_vm0, %v6167_v47 }
  0x62   :  { %5902 = vmatmul.mubr.msk.bf16.gmra.mrb[44].mxu0 %vm935_vm0, %v6168_v48  ;;  %6030 = vmatmul.mubr.msk.bf16.gmra.mrb[44].mxu1 %vm935_vm0, %v6169_v49 }
  0x63   :  { %5905 = vmatprep.mubr.msk.bf16.mxu0 %vm935_vm0, %v6170_v50  ;;  %6033 = vmatprep.mubr.msk.bf16.mxu1 %vm935_vm0, %v6171_v51 }
  0x6a   :  { %5906 = vmatmul.mubr.msk.bf16.gmra.mrb[48].mxu0 %vm935_vm0, %v6172_v52  ;;  %6034 = vmatmul.mubr.msk.bf16.gmra.mrb[48].mxu1 %vm935_vm0, %v6173_v53 }
  0x6b   :  { %5909 = vmatprep.mubr.msk.bf16.mxu0 %vm935_vm0, %v6174_v54  ;;  %6037 = vmatprep.mubr.msk.bf16.mxu1 %vm935_vm0, %v6175_v55 }
  0x72   :  { %5910 = vmatmul.mubr.msk.bf16.gmra.mrb[52].mxu0 %vm935_vm0, %v6176_v56  ;;  %6038 = vmatmul.mubr.msk.bf16.gmra.mrb[52].mxu1 %vm935_vm0, %v6177_v57 }
  0x73   :  { %5913 = vmatprep.mubr.msk.bf16.mxu0 %vm935_vm0, %v6178_v58  ;;  %6041 = vmatprep.mubr.msk.bf16.mxu1 %vm935_vm0, %v6179_v59 }
  0x7a   :  { %5914 = vmatmul.mubr.msk.bf16.gmra.mrb[56].mxu0 %vm935_vm0, %v6180_v60  ;;  %6042 = vmatmul.mubr.msk.bf16.gmra.mrb[56].mxu1 %vm935_vm0, %v6181_v61 }
  0x7b   :  { %5917 = vmatprep.mubr.msk.bf16.mxu0 %vm935_vm0, %v6182_v62  ;;  %6045 = vmatprep.mubr.msk.bf16.mxu1 %vm935_vm0, %v6183_v63 }
  0x82   :  { %5918 = vmatmul.mubr.msk.bf16.gmra.mrb[60].mxu0 %vm935_vm0, %v6184_v0  ;;  %6046 = vmatmul.mubr.msk.bf16.gmra.mrb[60].mxu1 %vm935_vm0, %v6185_v1 }
  0x83   :  { %8 = vsyncpa [#allocation3], 0  ;;  %5921 = vmatprep.mubr.msk.bf16.mxu0 %vm935_vm0, %v6186_v2  ;;  %6049 = vmatprep.mubr.msk.bf16.mxu1 %vm935_vm0, %v6187_v3  ;;  %v6188_v4 = vld [vmem:[%s7100_s0 + $0x108] sm:$0xff]   ;;  %v6190_v6 = vld [vmem:[%s7100_s0 + $0x110] sm:$0xff]  }
  0x84   :  { %v6189_v5 = vld [vmem:[%s7100_s0 + $0x308] sm:$0xff]   ;;  %v6191_v7 = vld [vmem:[%s7100_s0 + $0x310] sm:$0xff]   ;;  %v6192_v8 = vld [vmem:[%s7100_s0 + $0x118] sm:$0xff]  }
  0x85   :  { %v6193_v9 = vld [vmem:[%s7100_s0 + $0x318] sm:$0xff]   ;;  %v6194_v10 = vld [vmem:[%s7100_s0 + $0x120] sm:$0xff]   ;;  %v6196_v12 = vld [vmem:[%s7100_s0 + $0x128] sm:$0xff]  }
  0x86   :  { %v6195_v11 = vld [vmem:[%s7100_s0 + $0x320] sm:$0xff]   ;;  %v6197_v13 = vld [vmem:[%s7100_s0 + $0x328] sm:$0xff]   ;;  %v6198_v14 = vld [vmem:[%s7100_s0 + $0x130] sm:$0xff]  }
  0x87   :  { %v6199_v15 = vld [vmem:[%s7100_s0 + $0x330] sm:$0xff]   ;;  %v6200_v16 = vld [vmem:[%s7100_s0 + $0x138] sm:$0xff]   ;;  %v6202_v18 = vld [vmem:[%s7100_s0 + $0x140] sm:$0xff]  }
  0x88   :  { %v6201_v17 = vld [vmem:[%s7100_s0 + $0x338] sm:$0xff]   ;;  %v6203_v19 = vld [vmem:[%s7100_s0 + $0x340] sm:$0xff]   ;;  %v6204_v20 = vld [vmem:[%s7100_s0 + $0x148] sm:$0xff]  }
  0x89   :  { %v6205_v21 = vld [vmem:[%s7100_s0 + $0x348] sm:$0xff]   ;;  %v6206_v22 = vld [vmem:[%s7100_s0 + $0x150] sm:$0xff]   ;;  %v6208_v24 = vld [vmem:[%s7100_s0 + $0x158] sm:$0xff]  }
  0x8a   :  { %5922 = vmatmul.mubr.msk.bf16.gmra.mrb[64].mxu0 %vm935_vm0, %v6188_v4  ;;  %6050 = vmatmul.mubr.msk.bf16.gmra.mrb[64].mxu1 %vm935_vm0, %v6189_v5  ;;  %v6207_v23 = vld [vmem:[%s7100_s0 + $0x350] sm:$0xff]   ;;  %v6209_v25 = vld [vmem:[%s7100_s0 + $0x358] sm:$0xff]   ;;  %v6210_v26 = vld [vmem:[%s7100_s0 + $0x160] sm:$0xff]  }
  0x8b   :  { %5925 = vmatprep.mubr.msk.bf16.mxu0 %vm935_vm0, %v6190_v6  ;;  %6053 = vmatprep.mubr.msk.bf16.mxu1 %vm935_vm0, %v6191_v7  ;;  %v6211_v27 = vld [vmem:[%s7100_s0 + $0x360] sm:$0xff]   ;;  %v6212_v28 = vld [vmem:[%s7100_s0 + $0x168] sm:$0xff]   ;;  %v6214_v30 = vld [vmem:[%s7100_s0 + $0x170] sm:$0xff]  }
  0x8c   :  { %v6213_v29 = vld [vmem:[%s7100_s0 + $0x368] sm:$0xff]   ;;  %v6215_v31 = vld [vmem:[%s7100_s0 + $0x370] sm:$0xff]   ;;  %v6216_v32 = vld [vmem:[%s7100_s0 + $0x178] sm:$0xff]  }
  0x8d   :  { %v6217_v33 = vld [vmem:[%s7100_s0 + $0x378] sm:$0xff]   ;;  %v6218_v34 = vld [vmem:[%s7100_s0 + $0x180] sm:$0xff]   ;;  %v6220_v36 = vld [vmem:[%s7100_s0 + $0x188] sm:$0xff]  }
  0x8e   :  { %v6219_v35 = vld [vmem:[%s7100_s0 + $0x380] sm:$0xff]   ;;  %v6221_v37 = vld [vmem:[%s7100_s0 + $0x388] sm:$0xff]   ;;  %v6222_v38 = vld [vmem:[%s7100_s0 + $0x190] sm:$0xff]  }
  0x8f   :  { %v6223_v39 = vld [vmem:[%s7100_s0 + $0x390] sm:$0xff]   ;;  %v6224_v40 = vld [vmem:[%s7100_s0 + $0x198] sm:$0xff]   ;;  %v6226_v42 = vld [vmem:[%s7100_s0 + $0x1a0] sm:$0xff]  }
  0x90   :  { %v6225_v41 = vld [vmem:[%s7100_s0 + $0x398] sm:$0xff]   ;;  %v6227_v43 = vld [vmem:[%s7100_s0 + $0x3a0] sm:$0xff]   ;;  %v6228_v44 = vld [vmem:[%s7100_s0 + $0x1a8] sm:$0xff]  }
  0x91   :  { %v6229_v45 = vld [vmem:[%s7100_s0 + $0x3a8] sm:$0xff]   ;;  %v6230_v46 = vld [vmem:[%s7100_s0 + $0x1b0] sm:$0xff]   ;;  %v6746_v48 = vld [vmem:[%s7102_s2] ss:$0 sm:$0xff] }
  0x92   :  { %5926 = vmatmul.mubr.msk.bf16.gmra.mrb[68].mxu0 %vm935_vm0, %v6192_v8  ;;  %6054 = vmatmul.mubr.msk.bf16.gmra.mrb[68].mxu1 %vm935_vm0, %v6193_v9  ;;  %v6231_v47 = vld [vmem:[%s7100_s0 + $0x3b0] sm:$0xff]   ;;  %v6232_v55 = vld [vmem:[%s7100_s0 + $0x1b8] sm:$0xff]   ;;  %v6234_v61 = vld [vmem:[%s7100_s0 + $0x1c0] sm:$0xff]  }
  0x93   :  { %5929 = vmatprep.mubr.msk.bf16.mxu0 %vm935_vm0, %v6194_v10  ;;  %6057 = vmatprep.mubr.msk.bf16.mxu1 %vm935_vm0, %v6195_v11  ;;  %v6233_v56 = vld [vmem:[%s7100_s0 + $0x3b8] sm:$0xff]   ;;  %v6235_v62 = vld [vmem:[%s7100_s0 + $0x3c0] sm:$0xff]  }
  0x9a   :  { %5930 = vmatmul.mubr.msk.bf16.gmra.mrb[72].mxu0 %vm935_vm0, %v6196_v12  ;;  %6058 = vmatmul.mubr.msk.bf16.gmra.mrb[72].mxu1 %vm935_vm0, %v6197_v13 }
  0x9b   :  { %5933 = vmatprep.mubr.msk.bf16.mxu0 %vm935_vm0, %v6198_v14  ;;  %6061 = vmatprep.mubr.msk.bf16.mxu1 %vm935_vm0, %v6199_v15 }
  0xa2   :  { %5934 = vmatmul.mubr.msk.bf16.gmra.mrb[76].mxu0 %vm935_vm0, %v6200_v16  ;;  %6062 = vmatmul.mubr.msk.bf16.gmra.mrb[76].mxu1 %vm935_vm0, %v6201_v17 }
  0xa3   :  { %5937 = vmatprep.mubr.msk.bf16.mxu0 %vm935_vm0, %v6202_v18  ;;  %6065 = vmatprep.mubr.msk.bf16.mxu1 %vm935_vm0, %v6203_v19 }
  0xaa   :  { %5938 = vmatmul.mubr.msk.bf16.gmra.mrb[80].mxu0 %vm935_vm0, %v6204_v20  ;;  %6066 = vmatmul.mubr.msk.bf16.gmra.mrb[80].mxu1 %vm935_vm0, %v6205_v21 }
  0xab   :  { %5941 = vmatprep.mubr.msk.bf16.mxu0 %vm935_vm0, %v6206_v22  ;;  %6069 = vmatprep.mubr.msk.bf16.mxu1 %vm935_vm0, %v6207_v23 }
  0xb2   :  { %5942 = vmatmul.mubr.msk.bf16.gmra.mrb[84].mxu0 %vm935_vm0, %v6208_v24  ;;  %6070 = vmatmul.mubr.msk.bf16.gmra.mrb[84].mxu1 %vm935_vm0, %v6209_v25 }
  0xb3   :  { %5945 = vmatprep.mubr.msk.bf16.mxu0 %vm935_vm0, %v6210_v26  ;;  %6073 = vmatprep.mubr.msk.bf16.mxu1 %vm935_vm0, %v6211_v27 }
  0xba   :  { %5946 = vmatmul.mubr.msk.bf16.gmra.mrb[88].mxu0 %vm935_vm0, %v6212_v28  ;;  %6074 = vmatmul.mubr.msk.bf16.gmra.mrb[88].mxu1 %vm935_vm0, %v6213_v29  ;;  %v6236_v29 = vld [vmem:[%s7100_s0 + $0x1c8] sm:$0xff]  }
  0xbb   :  { %5949 = vmatprep.mubr.msk.bf16.mxu0 %vm935_vm0, %v6214_v30  ;;  %6077 = vmatprep.mubr.msk.bf16.mxu1 %vm935_vm0, %v6215_v31  ;;  %v6237_v30 = vld [vmem:[%s7100_s0 + $0x3c8] sm:$0xff]  }
  0xc2   :  { %5950 = vmatmul.mubr.msk.bf16.gmra.mrb[92].mxu0 %vm935_vm0, %v6216_v32  ;;  %6078 = vmatmul.mubr.msk.bf16.gmra.mrb[92].mxu1 %vm935_vm0, %v6217_v33 }
  0xc3   :  { %5953 = vmatprep.mubr.msk.bf16.mxu0 %vm935_vm0, %v6218_v34  ;;  %6081 = vmatprep.mubr.msk.bf16.mxu1 %vm935_vm0, %v6219_v35 }
  0xca   :  { %5954 = vmatmul.mubr.msk.bf16.gmra.mrb[96].mxu0 %vm935_vm0, %v6220_v36  ;;  %6082 = vmatmul.mubr.msk.bf16.gmra.mrb[96].mxu1 %vm935_vm0, %v6221_v37  ;;  %v6238_v37 = vld [vmem:[%s7100_s0 + $0x1d0] sm:$0xff]  }
  0xcb   :  { %5957 = vmatprep.mubr.msk.bf16.mxu0 %vm935_vm0, %v6222_v38  ;;  %6085 = vmatprep.mubr.msk.bf16.mxu1 %vm935_vm0, %v6223_v39  ;;  %v6239_v38 = vld [vmem:[%s7100_s0 + $0x3d0] sm:$0xff]  }
  0xd2   :  { %5958 = vmatmul.mubr.msk.bf16.gmra.mrb[100].mxu0 %vm935_vm0, %v6224_v40  ;;  %6086 = vmatmul.mubr.msk.bf16.gmra.mrb[100].mxu1 %vm935_vm0, %v6225_v41 }
  0xd3   :  { %5961 = vmatprep.mubr.msk.bf16.mxu0 %vm935_vm0, %v6226_v42  ;;  %6089 = vmatprep.mubr.msk.bf16.mxu1 %vm935_vm0, %v6227_v43 }
  0xda   :  { %5962 = vmatmul.mubr.msk.bf16.gmra.mrb[104].mxu0 %vm935_vm0, %v6228_v44  ;;  %6090 = vmatmul.mubr.msk.bf16.gmra.mrb[104].mxu1 %vm935_vm0, %v6229_v45 }
  0xdb   :  { %5965 = vmatprep.mubr.msk.bf16.mxu0 %vm935_vm0, %v6230_v46  ;;  %6093 = vmatprep.mubr.msk.bf16.mxu1 %vm935_vm0, %v6231_v47 }
  0xdd   :  { %v5859_v49 = vpop.f32.mrb[0].mxu0  ;;  %v5987_v50 = vpop.f32.mrb[0].mxu1 }
  0xde   :  { %v1363_v51 = vadd.f32 %v5859_v49, %v6746_v48  ;;  %v1875_v52 = vadd.f32 %v5987_v50, %v6746_v48  ;;  %v1354_v53 = vpop.f32.mrb[1].mxu0  ;;  %v1866_v54 = vpop.f32.mrb[1].mxu1 }
  0xdf   :  { %v1355_v57 = vadd.f32 %v6746_v48, %v1354_v53  ;;  %v1867_v58 = vadd.f32 %v6746_v48, %v1866_v54  ;;  %v5860_v59 = vpop.f32.mrb[2].mxu0  ;;  %v5988_v60 = vpop.f32.mrb[2].mxu1 }
  0xe0   :  { %v2379_v63 = vmul.f32 0.01, %v1363_v51  ;;  %v2507_v0 = vmul.f32 0.01, %v1875_v52  ;;  %v1366_v1 = vadd.f32 %v5860_v59, %v6746_v48  ;;  %v1878_v2 = vadd.f32 %v5988_v60, %v6746_v48  ;;  %v1357_v3 = vpop.f32.mrb[3].mxu0  ;;  %v1869_v4 = vpop.f32.mrb[3].mxu1 }
  0xe1   :  { %v2377_v5 = vmul.f32 0.01, %v1355_v57  ;;  %v2505_v6 = vmul.f32 0.01, %v1867_v58  ;;  %v1358_v7 = vadd.f32 %v6746_v48, %v1357_v3  ;;  %v1870_v8 = vadd.f32 %v6746_v48, %v1869_v4 }
  0xe2   :  { %v2380_v9 = vmul.f32 0.01, %v1366_v1  ;;  %v2508_v10 = vmul.f32 0.01, %v1878_v2  ;;  %5966 = vmatmul.mubr.msk.bf16.gmra.mrb[108].mxu0 %vm935_vm0, %v6232_v55  ;;  %6094 = vmatmul.mubr.msk.bf16.gmra.mrb[108].mxu1 %vm935_vm0, %v6233_v56  ;;  %v2635_v13 = vmax.f32 %v1363_v51, %v2379_v63  ;;  %v2763_v14 = vmax.f32 %v1875_v52, %v2507_v0 }
  0xe3   :  { %v2378_v11 = vmul.f32 0.01, %v1358_v7  ;;  %v2506_v12 = vmul.f32 0.01, %v1870_v8  ;;  %5969 = vmatprep.mubr.msk.bf16.mxu0 %vm935_vm0, %v6234_v61  ;;  %6097 = vmatprep.mubr.msk.bf16.mxu1 %vm935_vm0, %v6235_v62  ;;  %v2633_v17 = vmax.f32 %v1355_v57, %v2377_v5  ;;  %v2761_v18 = vmax.f32 %v1867_v58, %v2505_v6  ;;  %v6240_v6 = vld [vmem:[%s7100_s0 + $0x1d8] sm:$0xff]  }
  0xe4   :  { %v2636_v15 = vmax.f32 %v1366_v1, %v2380_v9  ;;  %v2764_v16 = vmax.f32 %v1878_v2, %v2508_v10 }
  0xe5   :  { %v2634_v19 = vmax.f32 %v1358_v7, %v2378_v11  ;;  %v2762_v20 = vmax.f32 %v1870_v8, %v2506_v12  ;;  %v5863_v21 = vpop.f32.mrb[4].mxu0  ;;  %v5991_v22 = vpop.f32.mrb[4].mxu1  ;;  %v6241_v7 = vld [vmem:[%s7100_s0 + $0x3d8] sm:$0xff]  }
  0xe6   :  { %v4964_v23 = vpack.c.bf16 %v2636_v15, %v2635_v13  ;;  %v5284_v24 = vpack.c.bf16 %v2764_v16, %v2763_v14  ;;  %v1379_v25 = vadd.f32 %v5863_v21, %v6746_v48  ;;  %v1891_v26 = vadd.f32 %v5991_v22, %v6746_v48  ;;  %v1370_v27 = vpop.f32.mrb[5].mxu0  ;;  %v1882_v28 = vpop.f32.mrb[5].mxu1  ;;  %v6242_v14 = vld [vmem:[%s7100_s0 + $0x1e0] sm:$0xff]  }
  0xe7   :  { %v4959_v31 = vpack.c.bf16 %v2634_v19, %v2633_v17  ;;  %v5279_v32 = vpack.c.bf16 %v2762_v20, %v2761_v18  ;;  %v1371_v33 = vadd.f32 %v6746_v48, %v1370_v27  ;;  %v1883_v34 = vadd.f32 %v6746_v48, %v1882_v28  ;;  %v5864_v35 = vpop.f32.mrb[6].mxu0  ;;  %v5992_v36 = vpop.f32.mrb[6].mxu1  ;;  %v6243_v15 = vld [vmem:[%s7100_s0 + $0x3e0] sm:$0xff]  }
  0xe8   :  { %5596 = vst [vmem:[#allocation2 + $0x8] sm:$0xff] %v4964_v23   ;;  %5660 = vst [vmem:[#allocation2 + $0x208] sm:$0xff] %v5284_v24   ;;  %v2383_v39 = vmul.f32 0.01, %v1379_v25  ;;  %v2511_v40 = vmul.f32 0.01, %v1891_v26  ;;  %v1382_v41 = vadd.f32 %v5864_v35, %v6746_v48  ;;  %v1894_v42 = vadd.f32 %v5992_v36, %v6746_v48 }
  0xe9   :  { %v1373_v43 = vpop.f32.mrb[7].mxu0  ;;  %v1885_v44 = vpop.f32.mrb[7].mxu1  ;;  %4960 = vst [vmem:[#allocation2] sm:$0xff] %v4959_v31   ;;  %5659 = vst [vmem:[#allocation2 + $0x200] sm:$0xff] %v5279_v32   ;;  %v2381_v45 = vmul.f32 0.01, %v1371_v33 }
  0xea   :  { %v2509_v46 = vmul.f32 0.01, %v1883_v34  ;;  %v1374_v47 = vadd.f32 %v6746_v48, %v1373_v43  ;;  %v1886_v49 = vadd.f32 %v6746_v48, %v1885_v44  ;;  %v2384_v50 = vmul.f32 0.01, %v1382_v41  ;;  %5970 = vmatmul.mubr.msk.bf16.gmra.mrb[112].mxu0 %vm935_vm0, %v6236_v29  ;;  %6098 = vmatmul.mubr.msk.bf16.gmra.mrb[112].mxu1 %vm935_vm0, %v6237_v30 }
  0xeb   :  { %v2512_v51 = vmul.f32 0.01, %v1894_v42  ;;  %5973 = vmatprep.mubr.msk.bf16.mxu0 %vm935_vm0, %v6238_v37  ;;  %6101 = vmatprep.mubr.msk.bf16.mxu1 %vm935_vm0, %v6239_v38  ;;  %v2639_v54 = vmax.f32 %v1379_v25, %v2383_v39  ;;  %v2767_v55 = vmax.f32 %v1891_v26, %v2511_v40  ;;  %v2637_v58 = vmax.f32 %v1371_v33, %v2381_v45 }
  0xec   :  { %v2382_v52 = vmul.f32 0.01, %v1374_v47  ;;  %v2510_v53 = vmul.f32 0.01, %v1886_v49  ;;  %v2640_v56 = vmax.f32 %v1382_v41, %v2384_v50  ;;  %v2765_v59 = vmax.f32 %v1883_v34, %v2509_v46  ;;  %v6244_v46 = vld [vmem:[%s7100_s0 + $0x1e8] sm:$0xff]  }
  0xed   :  { %v2768_v57 = vmax.f32 %v1894_v42, %v2512_v51  ;;  %v5867_v62 = vpop.f32.mrb[8].mxu0  ;;  %v5995_v63 = vpop.f32.mrb[8].mxu1 }
  0xee   :  { %v2638_v60 = vmax.f32 %v1374_v47, %v2382_v52  ;;  %v2766_v61 = vmax.f32 %v1886_v49, %v2510_v53  ;;  %v4974_v0 = vpack.c.bf16 %v2640_v56, %v2639_v54  ;;  %v1395_v2 = vadd.f32 %v5867_v62, %v6746_v48  ;;  %v1386_v4 = vpop.f32.mrb[9].mxu0  ;;  %v1898_v5 = vpop.f32.mrb[9].mxu1  ;;  %v6245_v47 = vld [vmem:[%s7100_s0 + $0x3e8] sm:$0xff]   ;;  %v6247_v56 = vld [vmem:[%s7100_s0 + $0x3f0] sm:$0xff]  }
  0xef   :  { %v5294_v1 = vpack.c.bf16 %v2768_v57, %v2767_v55  ;;  %v1907_v3 = vadd.f32 %v5995_v63, %v6746_v48  ;;  %v1387_v10 = vadd.f32 %v6746_v48, %v1386_v4  ;;  %v1899_v11 = vadd.f32 %v6746_v48, %v1898_v5  ;;  %v5868_v12 = vpop.f32.mrb[10].mxu0  ;;  %v5996_v13 = vpop.f32.mrb[10].mxu1  ;;  %v6246_v55 = vld [vmem:[%s7100_s0 + $0x1f0] sm:$0xff]  }
  0xf0   :  { %v4969_v8 = vpack.c.bf16 %v2638_v60, %v2637_v58  ;;  %v5289_v9 = vpack.c.bf16 %v2766_v61, %v2765_v59  ;;  %5598 = vst [vmem:[#allocation2 + $0x18] sm:$0xff] %v4974_v0   ;;  %v2387_v16 = vmul.f32 0.01, %v1395_v2  ;;  %v1398_v18 = vadd.f32 %v5868_v12, %v6746_v48  ;;  %v1389_v20 = vpop.f32.mrb[11].mxu0  ;;  %v1901_v21 = vpop.f32.mrb[11].mxu1 }
  0xf1   :  { %5662 = vst [vmem:[#allocation2 + $0x218] sm:$0xff] %v5294_v1   ;;  %v2515_v17 = vmul.f32 0.01, %v1907_v3  ;;  %v1910_v19 = vadd.f32 %v5996_v13, %v6746_v48  ;;  %v2385_v22 = vmul.f32 0.01, %v1387_v10  ;;  %v1390_v24 = vadd.f32 %v6746_v48, %v1389_v20 }
  0xf2   :  { %5597 = vst [vmem:[#allocation2 + $0x10] sm:$0xff] %v4969_v8   ;;  %5661 = vst [vmem:[#allocation2 + $0x210] sm:$0xff] %v5289_v9   ;;  %v2513_v23 = vmul.f32 0.01, %v1899_v11  ;;  %v1902_v25 = vadd.f32 %v6746_v48, %v1901_v21  ;;  %v2388_v26 = vmul.f32 0.01, %v1398_v18  ;;  %5974 = vmatmul.mubr.msk.bf16.gmra.mrb[116].mxu0 %vm935_vm0, %v6240_v6  ;;  %6102 = vmatmul.mubr.msk.bf16.gmra.mrb[116].mxu1 %vm935_vm0, %v6241_v7 }
  0xf3   :  { %v2516_v27 = vmul.f32 0.01, %v1910_v19  ;;  %v2386_v28 = vmul.f32 0.01, %v1390_v24  ;;  %5977 = vmatprep.mubr.msk.bf16.mxu0 %vm935_vm0, %v6242_v14  ;;  %6105 = vmatprep.mubr.msk.bf16.mxu1 %vm935_vm0, %v6243_v15  ;;  %v2643_v30 = vmax.f32 %v1395_v2, %v2387_v16  ;;  %v2771_v31 = vmax.f32 %v1907_v3, %v2515_v17 }
  0xf4   :  { %v2514_v29 = vmul.f32 0.01, %v1902_v25  ;;  %v2644_v32 = vmax.f32 %v1398_v18, %v2388_v26  ;;  %v2641_v34 = vmax.f32 %v1387_v10, %v2385_v22  ;;  %v2769_v35 = vmax.f32 %v1899_v11, %v2513_v23  ;;  %v6248_v23 = vld [vmem:[%s7100_s0 + $0x1f8] sm:$0xff]  }
  0xf5   :  { %v2772_v33 = vmax.f32 %v1910_v19, %v2516_v27  ;;  %v2642_v36 = vmax.f32 %v1390_v24, %v2386_v28  ;;  %v5871_v38 = vpop.f32.mrb[12].mxu0  ;;  %v5999_v39 = vpop.f32.mrb[12].mxu1  ;;  %v6249_v24 = vld [vmem:[%s7100_s0 + $0x3f8] sm:$0xff]  }
  0xf6   :  { %v2770_v37 = vmax.f32 %v1902_v25, %v2514_v29  ;;  %v4984_v40 = vpack.c.bf16 %v2644_v32, %v2643_v30  ;;  %v1411_v42 = vadd.f32 %v5871_v38, %v6746_v48  ;;  %v1923_v43 = vadd.f32 %v5999_v39, %v6746_v48  ;;  %v1402_v44 = vpop.f32.mrb[13].mxu0  ;;  %v1914_v45 = vpop.f32.mrb[13].mxu1 }
  0xf7   :  { %v5304_v41 = vpack.c.bf16 %v2772_v33, %v2771_v31  ;;  %v4979_v49 = vpack.c.bf16 %v2642_v36, %v2641_v34  ;;  %v1403_v51 = vadd.f32 %v6746_v48, %v1402_v44  ;;  %v1915_v52 = vadd.f32 %v6746_v48, %v1914_v45  ;;  %v5872_v53 = vpop.f32.mrb[14].mxu0  ;;  %v6000_v54 = vpop.f32.mrb[14].mxu1 }
  0xf8   :  { %v5299_v50 = vpack.c.bf16 %v2770_v37, %v2769_v35  ;;  %5600 = vst [vmem:[#allocation2 + $0x28] sm:$0xff] %v4984_v40   ;;  %v2391_v57 = vmul.f32 0.01, %v1411_v42  ;;  %v2519_v58 = vmul.f32 0.01, %v1923_v43  ;;  %v1414_v59 = vadd.f32 %v5872_v53, %v6746_v48  ;;  %v1405_v61 = vpop.f32.mrb[15].mxu0 }
  0xf9   :  { %5664 = vst [vmem:[#allocation2 + $0x228] sm:$0xff] %v5304_v41   ;;  %v1926_v60 = vadd.f32 %v6000_v54, %v6746_v48  ;;  %v1917_v62 = vpop.f32.mrb[15].mxu1  ;;  %5599 = vst [vmem:[#allocation2 + $0x20] sm:$0xff] %v4979_v49   ;;  %v2389_v63 = vmul.f32 0.01, %v1403_v51  ;;  %v1406_v1 = vadd.f32 %v6746_v48, %v1405_v61 }
  0xfa   :  { %5663 = vst [vmem:[#allocation2 + $0x220] sm:$0xff] %v5299_v50   ;;  %v2517_v0 = vmul.f32 0.01, %v1915_v52  ;;  %v1918_v2 = vadd.f32 %v6746_v48, %v1917_v62  ;;  %v2392_v3 = vmul.f32 0.01, %v1414_v59  ;;  %5978 = vmatmul.mubr.msk.bf16.gmra.mrb[120].mxu0 %vm935_vm0, %v6244_v46  ;;  %6106 = vmatmul.mubr.msk.bf16.gmra.mrb[120].mxu1 %vm935_vm0, %v6245_v47  ;;  %v2647_v7 = vmax.f32 %v1411_v42, %v2391_v57 }
  0xfb   :  { %v2520_v4 = vmul.f32 0.01, %v1926_v60  ;;  %v2390_v5 = vmul.f32 0.01, %v1406_v1  ;;  %5981 = vmatprep.mubr.msk.bf16.mxu0 %vm935_vm0, %v6246_v55  ;;  %6109 = vmatprep.mubr.msk.bf16.mxu1 %vm935_vm0, %v6247_v56  ;;  %v2775_v8 = vmax.f32 %v1923_v43, %v2519_v58  ;;  %v2645_v11 = vmax.f32 %v1403_v51, %v2389_v63 }
  0xfc   :  { %v2518_v6 = vmul.f32 0.01, %v1918_v2  ;;  %v2648_v9 = vmax.f32 %v1414_v59, %v2392_v3  ;;  %v2773_v12 = vmax.f32 %v1915_v52, %v2517_v0 }
  0xfd   :  { %v2776_v10 = vmax.f32 %v1926_v60, %v2520_v4  ;;  %v2646_v13 = vmax.f32 %v1406_v1, %v2390_v5  ;;  %v5875_v15 = vpop.f32.mrb[16].mxu0  ;;  %v6003_v16 = vpop.f32.mrb[16].mxu1 }
  0xfe   :  { %v2774_v14 = vmax.f32 %v1918_v2, %v2518_v6  ;;  %v4994_v17 = vpack.c.bf16 %v2648_v9, %v2647_v7  ;;  %v1427_v19 = vadd.f32 %v5875_v15, %v6746_v48  ;;  %v1939_v20 = vadd.f32 %v6003_v16, %v6746_v48  ;;  %v1418_v21 = vpop.f32.mrb[17].mxu0  ;;  %v1930_v22 = vpop.f32.mrb[17].mxu1 }
  0xff   :  { %v5314_v18 = vpack.c.bf16 %v2776_v10, %v2775_v8  ;;  %v4989_v25 = vpack.c.bf16 %v2646_v13, %v2645_v11  ;;  %v1419_v27 = vadd.f32 %v6746_v48, %v1418_v21  ;;  %v1931_v28 = vadd.f32 %v6746_v48, %v1930_v22  ;;  %v5876_v29 = vpop.f32.mrb[18].mxu0  ;;  %v6004_v30 = vpop.f32.mrb[18].mxu1 }
 0x100   :  { %v5309_v26 = vpack.c.bf16 %v2774_v14, %v2773_v12  ;;  %5602 = vst [vmem:[#allocation2 + $0x38] sm:$0xff] %v4994_v17   ;;  %v2395_v31 = vmul.f32 0.01, %v1427_v19  ;;  %v2523_v32 = vmul.f32 0.01, %v1939_v20  ;;  %v1430_v33 = vadd.f32 %v5876_v29, %v6746_v48  ;;  %v1421_v35 = vpop.f32.mrb[19].mxu0 }
 0x101   :  { %5666 = vst [vmem:[#allocation2 + $0x238] sm:$0xff] %v5314_v18   ;;  %v1942_v34 = vadd.f32 %v6004_v30, %v6746_v48  ;;  %v1933_v36 = vpop.f32.mrb[19].mxu1  ;;  %5601 = vst [vmem:[#allocation2 + $0x30] sm:$0xff] %v4989_v25   ;;  %v2393_v37 = vmul.f32 0.01, %v1419_v27  ;;  %v1422_v39 = vadd.f32 %v6746_v48, %v1421_v35 }
 0x102   :  { %5665 = vst [vmem:[#allocation2 + $0x230] sm:$0xff] %v5309_v26   ;;  %v2521_v38 = vmul.f32 0.01, %v1931_v28  ;;  %v1934_v40 = vadd.f32 %v6746_v48, %v1933_v36  ;;  %v2396_v41 = vmul.f32 0.01, %v1430_v33  ;;  %5982 = vmatmul.mubr.msk.bf16.gmra.mrb[124].mxu0 %vm935_vm0, %v6248_v23  ;;  %6110 = vmatmul.mubr.msk.bf16.gmra.mrb[124].mxu1 %vm935_vm0, %v6249_v24  ;;  %v2651_v45 = vmax.f32 %v1427_v19, %v2395_v31 }
 0x103   :  { %v2524_v42 = vmul.f32 0.01, %v1942_v34  ;;  %v2394_v43 = vmul.f32 0.01, %v1422_v39  ;;  %v2779_v46 = vmax.f32 %v1939_v20, %v2523_v32  ;;  %v2649_v50 = vmax.f32 %v1419_v27, %v2393_v37 }
 0x104   :  { %v2522_v44 = vmul.f32 0.01, %v1934_v40  ;;  %v2652_v47 = vmax.f32 %v1430_v33, %v2396_v41  ;;  %v2777_v51 = vmax.f32 %v1931_v28, %v2521_v38 }
 0x105   :  { %v2780_v49 = vmax.f32 %v1942_v34, %v2524_v42  ;;  %v2650_v52 = vmax.f32 %v1422_v39, %v2394_v43  ;;  %v5879_v54 = vpop.f32.mrb[20].mxu0  ;;  %v6007_v55 = vpop.f32.mrb[20].mxu1 }
 0x106   :  { %v2778_v53 = vmax.f32 %v1934_v40, %v2522_v44  ;;  %v5004_v56 = vpack.c.bf16 %v2652_v47, %v2651_v45  ;;  %v1443_v58 = vadd.f32 %v5879_v54, %v6746_v48  ;;  %v1955_v59 = vadd.f32 %v6007_v55, %v6746_v48  ;;  %v1434_v60 = vpop.f32.mrb[21].mxu0  ;;  %v1946_v61 = vpop.f32.mrb[21].mxu1 }
 0x107   :  { %v5324_v57 = vpack.c.bf16 %v2780_v49, %v2779_v46  ;;  %v4999_v62 = vpack.c.bf16 %v2650_v52, %v2649_v50  ;;  %v1435_v0 = vadd.f32 %v6746_v48, %v1434_v60  ;;  %v1947_v1 = vadd.f32 %v6746_v48, %v1946_v61  ;;  %v5880_v2 = vpop.f32.mrb[22].mxu0  ;;  %v6008_v3 = vpop.f32.mrb[22].mxu1 }
 0x108   :  { %v5319_v63 = vpack.c.bf16 %v2778_v53, %v2777_v51  ;;  %5604 = vst [vmem:[#allocation2 + $0x48] sm:$0xff] %v5004_v56   ;;  %v2399_v4 = vmul.f32 0.01, %v1443_v58  ;;  %v2527_v5 = vmul.f32 0.01, %v1955_v59  ;;  %v1446_v6 = vadd.f32 %v5880_v2, %v6746_v48  ;;  %v1437_v8 = vpop.f32.mrb[23].mxu0 }
 0x109   :  { %5668 = vst [vmem:[#allocation2 + $0x248] sm:$0xff] %v5324_v57   ;;  %v1958_v7 = vadd.f32 %v6008_v3, %v6746_v48  ;;  %v1949_v9 = vpop.f32.mrb[23].mxu1  ;;  %5603 = vst [vmem:[#allocation2 + $0x40] sm:$0xff] %v4999_v62   ;;  %v2397_v10 = vmul.f32 0.01, %v1435_v0  ;;  %v1438_v12 = vadd.f32 %v6746_v48, %v1437_v8 }
 0x10a   :  { %5667 = vst [vmem:[#allocation2 + $0x240] sm:$0xff] %v5319_v63   ;;  %v2525_v11 = vmul.f32 0.01, %v1947_v1  ;;  %v1950_v13 = vadd.f32 %v6746_v48, %v1949_v9  ;;  %v2400_v14 = vmul.f32 0.01, %v1446_v6  ;;  %v2655_v18 = vmax.f32 %v1443_v58, %v2399_v4 }
 0x10b   :  { %v2528_v15 = vmul.f32 0.01, %v1958_v7  ;;  %v2398_v16 = vmul.f32 0.01, %v1438_v12  ;;  %v2783_v19 = vmax.f32 %v1955_v59, %v2527_v5  ;;  %v2653_v22 = vmax.f32 %v1435_v0, %v2397_v10 }
 0x10c   :  { %v2526_v17 = vmul.f32 0.01, %v1950_v13  ;;  %v2656_v20 = vmax.f32 %v1446_v6, %v2400_v14  ;;  %v2781_v23 = vmax.f32 %v1947_v1, %v2525_v11 }
 0x10d   :  { %v2784_v21 = vmax.f32 %v1958_v7, %v2528_v15  ;;  %v2654_v24 = vmax.f32 %v1438_v12, %v2398_v16  ;;  %v5883_v26 = vpop.f32.mrb[24].mxu0  ;;  %v6011_v27 = vpop.f32.mrb[24].mxu1 }
 0x10e   :  { %v2782_v25 = vmax.f32 %v1950_v13, %v2526_v17  ;;  %v5014_v28 = vpack.c.bf16 %v2656_v20, %v2655_v18  ;;  %v1459_v30 = vadd.f32 %v5883_v26, %v6746_v48  ;;  %v1971_v31 = vadd.f32 %v6011_v27, %v6746_v48  ;;  %v1450_v32 = vpop.f32.mrb[25].mxu0  ;;  %v1962_v33 = vpop.f32.mrb[25].mxu1 }
 0x10f   :  { %v5334_v29 = vpack.c.bf16 %v2784_v21, %v2783_v19  ;;  %v5009_v34 = vpack.c.bf16 %v2654_v24, %v2653_v22  ;;  %v1451_v36 = vadd.f32 %v6746_v48, %v1450_v32  ;;  %v1963_v37 = vadd.f32 %v6746_v48, %v1962_v33  ;;  %v5884_v38 = vpop.f32.mrb[26].mxu0  ;;  %v6012_v39 = vpop.f32.mrb[26].mxu1 }
 0x110   :  { %v5329_v35 = vpack.c.bf16 %v2782_v25, %v2781_v23  ;;  %5606 = vst [vmem:[#allocation2 + $0x58] sm:$0xff] %v5014_v28   ;;  %v2403_v40 = vmul.f32 0.01, %v1459_v30  ;;  %v2531_v41 = vmul.f32 0.01, %v1971_v31  ;;  %v1462_v42 = vadd.f32 %v5884_v38, %v6746_v48  ;;  %v1453_v44 = vpop.f32.mrb[27].mxu0 }
 0x111   :  { %5670 = vst [vmem:[#allocation2 + $0x258] sm:$0xff] %v5334_v29   ;;  %v1974_v43 = vadd.f32 %v6012_v39, %v6746_v48  ;;  %v1965_v45 = vpop.f32.mrb[27].mxu1  ;;  %5605 = vst [vmem:[#allocation2 + $0x50] sm:$0xff] %v5009_v34   ;;  %v2401_v46 = vmul.f32 0.01, %v1451_v36  ;;  %v1454_v49 = vadd.f32 %v6746_v48, %v1453_v44 }
 0x112   :  { %5669 = vst [vmem:[#allocation2 + $0x250] sm:$0xff] %v5329_v35   ;;  %v2529_v47 = vmul.f32 0.01, %v1963_v37  ;;  %v1966_v50 = vadd.f32 %v6746_v48, %v1965_v45  ;;  %v2404_v51 = vmul.f32 0.01, %v1462_v42  ;;  %v2659_v55 = vmax.f32 %v1459_v30, %v2403_v40 }
 0x113   :  { %v2532_v52 = vmul.f32 0.01, %v1974_v43  ;;  %v2402_v53 = vmul.f32 0.01, %v1454_v49  ;;  %v2787_v56 = vmax.f32 %v1971_v31, %v2531_v41  ;;  %v2657_v59 = vmax.f32 %v1451_v36, %v2401_v46 }
 0x114   :  { %v2530_v54 = vmul.f32 0.01, %v1966_v50  ;;  %v2660_v57 = vmax.f32 %v1462_v42, %v2404_v51  ;;  %v2785_v60 = vmax.f32 %v1963_v37, %v2529_v47 }
 0x115   :  { %v2788_v58 = vmax.f32 %v1974_v43, %v2532_v52  ;;  %v2658_v61 = vmax.f32 %v1454_v49, %v2402_v53  ;;  %v5887_v63 = vpop.f32.mrb[28].mxu0  ;;  %v6015_v0 = vpop.f32.mrb[28].mxu1 }
 0x116   :  { %v2786_v62 = vmax.f32 %v1966_v50, %v2530_v54  ;;  %v5024_v1 = vpack.c.bf16 %v2660_v57, %v2659_v55  ;;  %v1475_v3 = vadd.f32 %v5887_v63, %v6746_v48  ;;  %v1987_v4 = vadd.f32 %v6015_v0, %v6746_v48  ;;  %v1466_v5 = vpop.f32.mrb[29].mxu0  ;;  %v1978_v6 = vpop.f32.mrb[29].mxu1 }
 0x117   :  { %v5344_v2 = vpack.c.bf16 %v2788_v58, %v2787_v56  ;;  %v5019_v7 = vpack.c.bf16 %v2658_v61, %v2657_v59  ;;  %v1467_v9 = vadd.f32 %v6746_v48, %v1466_v5  ;;  %v1979_v10 = vadd.f32 %v6746_v48, %v1978_v6  ;;  %v5888_v11 = vpop.f32.mrb[30].mxu0  ;;  %v6016_v12 = vpop.f32.mrb[30].mxu1 }
 0x118   :  { %v5339_v8 = vpack.c.bf16 %v2786_v62, %v2785_v60  ;;  %5608 = vst [vmem:[#allocation2 + $0x68] sm:$0xff] %v5024_v1   ;;  %v2407_v13 = vmul.f32 0.01, %v1475_v3  ;;  %v2535_v14 = vmul.f32 0.01, %v1987_v4  ;;  %v1478_v15 = vadd.f32 %v5888_v11, %v6746_v48  ;;  %v1469_v17 = vpop.f32.mrb[31].mxu0 }
 0x119   :  { %5672 = vst [vmem:[#allocation2 + $0x268] sm:$0xff] %v5344_v2   ;;  %v1990_v16 = vadd.f32 %v6016_v12, %v6746_v48  ;;  %v1981_v18 = vpop.f32.mrb[31].mxu1  ;;  %5607 = vst [vmem:[#allocation2 + $0x60] sm:$0xff] %v5019_v7   ;;  %v2405_v19 = vmul.f32 0.01, %v1467_v9  ;;  %v1470_v21 = vadd.f32 %v6746_v48, %v1469_v17 }
 0x11a   :  { %5671 = vst [vmem:[#allocation2 + $0x260] sm:$0xff] %v5339_v8   ;;  %v2533_v20 = vmul.f32 0.01, %v1979_v10  ;;  %v1982_v22 = vadd.f32 %v6746_v48, %v1981_v18  ;;  %v2408_v23 = vmul.f32 0.01, %v1478_v15  ;;  %v2663_v27 = vmax.f32 %v1475_v3, %v2407_v13 }
 0x11b   :  { %v2536_v24 = vmul.f32 0.01, %v1990_v16  ;;  %v2406_v25 = vmul.f32 0.01, %v1470_v21  ;;  %v2791_v28 = vmax.f32 %v1987_v4, %v2535_v14  ;;  %v2661_v31 = vmax.f32 %v1467_v9, %v2405_v19 }
 0x11c   :  { %v2534_v26 = vmul.f32 0.01, %v1982_v22  ;;  %v2664_v29 = vmax.f32 %v1478_v15, %v2408_v23  ;;  %v2789_v32 = vmax.f32 %v1979_v10, %v2533_v20 }
 0x11d   :  { %v2792_v30 = vmax.f32 %v1990_v16, %v2536_v24  ;;  %v2662_v33 = vmax.f32 %v1470_v21, %v2406_v25  ;;  %v5891_v35 = vpop.f32.mrb[32].mxu0  ;;  %v6019_v36 = vpop.f32.mrb[32].mxu1 }
 0x11e   :  { %v2790_v34 = vmax.f32 %v1982_v22, %v2534_v26  ;;  %v5034_v37 = vpack.c.bf16 %v2664_v29, %v2663_v27  ;;  %v1491_v39 = vadd.f32 %v5891_v35, %v6746_v48  ;;  %v2003_v40 = vadd.f32 %v6019_v36, %v6746_v48  ;;  %v1482_v41 = vpop.f32.mrb[33].mxu0  ;;  %v1994_v42 = vpop.f32.mrb[33].mxu1 }
 0x11f   :  { %v5354_v38 = vpack.c.bf16 %v2792_v30, %v2791_v28  ;;  %v5029_v43 = vpack.c.bf16 %v2662_v33, %v2661_v31  ;;  %v1483_v45 = vadd.f32 %v6746_v48, %v1482_v41  ;;  %v1995_v46 = vadd.f32 %v6746_v48, %v1994_v42  ;;  %v5892_v47 = vpop.f32.mrb[34].mxu0  ;;  %v6020_v49 = vpop.f32.mrb[34].mxu1 }
 0x120   :  { %v5349_v44 = vpack.c.bf16 %v2790_v34, %v2789_v32  ;;  %5610 = vst [vmem:[#allocation2 + $0x78] sm:$0xff] %v5034_v37   ;;  %v2411_v50 = vmul.f32 0.01, %v1491_v39  ;;  %v2539_v51 = vmul.f32 0.01, %v2003_v40  ;;  %v1494_v52 = vadd.f32 %v5892_v47, %v6746_v48  ;;  %v1485_v54 = vpop.f32.mrb[35].mxu0 }
 0x121   :  { %5674 = vst [vmem:[#allocation2 + $0x278] sm:$0xff] %v5354_v38   ;;  %v2006_v53 = vadd.f32 %v6020_v49, %v6746_v48  ;;  %v1997_v55 = vpop.f32.mrb[35].mxu1  ;;  %5609 = vst [vmem:[#allocation2 + $0x70] sm:$0xff] %v5029_v43   ;;  %v2409_v56 = vmul.f32 0.01, %v1483_v45  ;;  %v1486_v58 = vadd.f32 %v6746_v48, %v1485_v54 }
 0x122   :  { %5673 = vst [vmem:[#allocation2 + $0x270] sm:$0xff] %v5349_v44   ;;  %v2537_v57 = vmul.f32 0.01, %v1995_v46  ;;  %v1998_v59 = vadd.f32 %v6746_v48, %v1997_v55  ;;  %v2412_v60 = vmul.f32 0.01, %v1494_v52  ;;  %v2667_v0 = vmax.f32 %v1491_v39, %v2411_v50 }
 0x123   :  { %v2540_v61 = vmul.f32 0.01, %v2006_v53  ;;  %v2410_v62 = vmul.f32 0.01, %v1486_v58  ;;  %v2795_v1 = vmax.f32 %v2003_v40, %v2539_v51  ;;  %v2665_v4 = vmax.f32 %v1483_v45, %v2409_v56 }
 0x124   :  { %v2538_v63 = vmul.f32 0.01, %v1998_v59  ;;  %v2668_v2 = vmax.f32 %v1494_v52, %v2412_v60  ;;  %v2793_v5 = vmax.f32 %v1995_v46, %v2537_v57 }
 0x125   :  { %v2796_v3 = vmax.f32 %v2006_v53, %v2540_v61  ;;  %v2666_v6 = vmax.f32 %v1486_v58, %v2410_v62  ;;  %v5895_v8 = vpop.f32.mrb[36].mxu0  ;;  %v6023_v9 = vpop.f32.mrb[36].mxu1 }
 0x126   :  { %v2794_v7 = vmax.f32 %v1998_v59, %v2538_v63  ;;  %v5044_v10 = vpack.c.bf16 %v2668_v2, %v2667_v0  ;;  %v1507_v12 = vadd.f32 %v5895_v8, %v6746_v48  ;;  %v2019_v13 = vadd.f32 %v6023_v9, %v6746_v48  ;;  %v1498_v14 = vpop.f32.mrb[37].mxu0  ;;  %v2010_v15 = vpop.f32.mrb[37].mxu1 }
 0x127   :  { %v5364_v11 = vpack.c.bf16 %v2796_v3, %v2795_v1  ;;  %v5039_v16 = vpack.c.bf16 %v2666_v6, %v2665_v4  ;;  %v1499_v18 = vadd.f32 %v6746_v48, %v1498_v14  ;;  %v2011_v19 = vadd.f32 %v6746_v48, %v2010_v15  ;;  %v5896_v20 = vpop.f32.mrb[38].mxu0  ;;  %v6024_v21 = vpop.f32.mrb[38].mxu1 }
 0x128   :  { %v5359_v17 = vpack.c.bf16 %v2794_v7, %v2793_v5  ;;  %5612 = vst [vmem:[#allocation2 + $0x88] sm:$0xff] %v5044_v10   ;;  %v2415_v22 = vmul.f32 0.01, %v1507_v12  ;;  %v2543_v23 = vmul.f32 0.01, %v2019_v13  ;;  %v1510_v24 = vadd.f32 %v5896_v20, %v6746_v48  ;;  %v1501_v26 = vpop.f32.mrb[39].mxu0 }
 0x129   :  { %5676 = vst [vmem:[#allocation2 + $0x288] sm:$0xff] %v5364_v11   ;;  %v2022_v25 = vadd.f32 %v6024_v21, %v6746_v48  ;;  %v2013_v27 = vpop.f32.mrb[39].mxu1  ;;  %5611 = vst [vmem:[#allocation2 + $0x80] sm:$0xff] %v5039_v16   ;;  %v2413_v28 = vmul.f32 0.01, %v1499_v18  ;;  %v1502_v30 = vadd.f32 %v6746_v48, %v1501_v26 }
 0x12a   :  { %5675 = vst [vmem:[#allocation2 + $0x280] sm:$0xff] %v5359_v17   ;;  %v2541_v29 = vmul.f32 0.01, %v2011_v19  ;;  %v2014_v31 = vadd.f32 %v6746_v48, %v2013_v27  ;;  %v2416_v32 = vmul.f32 0.01, %v1510_v24  ;;  %v2671_v36 = vmax.f32 %v1507_v12, %v2415_v22 }
 0x12b   :  { %v2544_v33 = vmul.f32 0.01, %v2022_v25  ;;  %v2414_v34 = vmul.f32 0.01, %v1502_v30  ;;  %v2799_v37 = vmax.f32 %v2019_v13, %v2543_v23  ;;  %v2669_v40 = vmax.f32 %v1499_v18, %v2413_v28 }
 0x12c   :  { %v2542_v35 = vmul.f32 0.01, %v2014_v31  ;;  %v2672_v38 = vmax.f32 %v1510_v24, %v2416_v32  ;;  %v2797_v41 = vmax.f32 %v2011_v19, %v2541_v29 }
 0x12d   :  { %v2800_v39 = vmax.f32 %v2022_v25, %v2544_v33  ;;  %v2670_v42 = vmax.f32 %v1502_v30, %v2414_v34  ;;  %v5899_v44 = vpop.f32.mrb[40].mxu0  ;;  %v6027_v45 = vpop.f32.mrb[40].mxu1 }
 0x12e   :  { %v2798_v43 = vmax.f32 %v2014_v31, %v2542_v35  ;;  %v5054_v46 = vpack.c.bf16 %v2672_v38, %v2671_v36  ;;  %v1523_v49 = vadd.f32 %v5899_v44, %v6746_v48  ;;  %v2035_v50 = vadd.f32 %v6027_v45, %v6746_v48  ;;  %v1514_v51 = vpop.f32.mrb[41].mxu0  ;;  %v2026_v52 = vpop.f32.mrb[41].mxu1 }
 0x12f   :  { %v5374_v47 = vpack.c.bf16 %v2800_v39, %v2799_v37  ;;  %v5049_v53 = vpack.c.bf16 %v2670_v42, %v2669_v40  ;;  %v1515_v55 = vadd.f32 %v6746_v48, %v1514_v51  ;;  %v2027_v56 = vadd.f32 %v6746_v48, %v2026_v52  ;;  %v5900_v57 = vpop.f32.mrb[42].mxu0  ;;  %v6028_v58 = vpop.f32.mrb[42].mxu1 }
 0x130   :  { %v5369_v54 = vpack.c.bf16 %v2798_v43, %v2797_v41  ;;  %5614 = vst [vmem:[#allocation2 + $0x98] sm:$0xff] %v5054_v46   ;;  %v2419_v59 = vmul.f32 0.01, %v1523_v49  ;;  %v2547_v60 = vmul.f32 0.01, %v2035_v50  ;;  %v1526_v61 = vadd.f32 %v5900_v57, %v6746_v48  ;;  %v1517_v63 = vpop.f32.mrb[43].mxu0 }
 0x131   :  { %5678 = vst [vmem:[#allocation2 + $0x298] sm:$0xff] %v5374_v47   ;;  %v2038_v62 = vadd.f32 %v6028_v58, %v6746_v48  ;;  %v2029_v0 = vpop.f32.mrb[43].mxu1  ;;  %5613 = vst [vmem:[#allocation2 + $0x90] sm:$0xff] %v5049_v53   ;;  %v2417_v1 = vmul.f32 0.01, %v1515_v55  ;;  %v1518_v3 = vadd.f32 %v6746_v48, %v1517_v63 }
 0x132   :  { %5677 = vst [vmem:[#allocation2 + $0x290] sm:$0xff] %v5369_v54   ;;  %v2545_v2 = vmul.f32 0.01, %v2027_v56  ;;  %v2030_v4 = vadd.f32 %v6746_v48, %v2029_v0  ;;  %v2420_v5 = vmul.f32 0.01, %v1526_v61  ;;  %v2675_v9 = vmax.f32 %v1523_v49, %v2419_v59 }
 0x133   :  { %v2548_v6 = vmul.f32 0.01, %v2038_v62  ;;  %v2418_v7 = vmul.f32 0.01, %v1518_v3  ;;  %v2803_v10 = vmax.f32 %v2035_v50, %v2547_v60  ;;  %v2673_v13 = vmax.f32 %v1515_v55, %v2417_v1 }
 0x134   :  { %v2546_v8 = vmul.f32 0.01, %v2030_v4  ;;  %v2676_v11 = vmax.f32 %v1526_v61, %v2420_v5  ;;  %v2801_v14 = vmax.f32 %v2027_v56, %v2545_v2 }
 0x135   :  { %v2804_v12 = vmax.f32 %v2038_v62, %v2548_v6  ;;  %v2674_v15 = vmax.f32 %v1518_v3, %v2418_v7  ;;  %v5903_v17 = vpop.f32.mrb[44].mxu0  ;;  %v6031_v18 = vpop.f32.mrb[44].mxu1 }
 0x136   :  { %v2802_v16 = vmax.f32 %v2030_v4, %v2546_v8  ;;  %v5064_v19 = vpack.c.bf16 %v2676_v11, %v2675_v9  ;;  %v1539_v21 = vadd.f32 %v5903_v17, %v6746_v48  ;;  %v2051_v22 = vadd.f32 %v6031_v18, %v6746_v48  ;;  %v1530_v23 = vpop.f32.mrb[45].mxu0  ;;  %v2042_v24 = vpop.f32.mrb[45].mxu1 }
 0x137   :  { %v5384_v20 = vpack.c.bf16 %v2804_v12, %v2803_v10  ;;  %v5059_v25 = vpack.c.bf16 %v2674_v15, %v2673_v13  ;;  %v1531_v27 = vadd.f32 %v6746_v48, %v1530_v23  ;;  %v2043_v28 = vadd.f32 %v6746_v48, %v2042_v24  ;;  %v5904_v29 = vpop.f32.mrb[46].mxu0  ;;  %v6032_v30 = vpop.f32.mrb[46].mxu1 }
 0x138   :  { %v5379_v26 = vpack.c.bf16 %v2802_v16, %v2801_v14  ;;  %5616 = vst [vmem:[#allocation2 + $0xa8] sm:$0xff] %v5064_v19   ;;  %v2423_v31 = vmul.f32 0.01, %v1539_v21  ;;  %v2551_v32 = vmul.f32 0.01, %v2051_v22  ;;  %v1542_v33 = vadd.f32 %v5904_v29, %v6746_v48  ;;  %v1533_v35 = vpop.f32.mrb[47].mxu0 }
 0x139   :  { %5680 = vst [vmem:[#allocation2 + $0x2a8] sm:$0xff] %v5384_v20   ;;  %v2054_v34 = vadd.f32 %v6032_v30, %v6746_v48  ;;  %v2045_v36 = vpop.f32.mrb[47].mxu1  ;;  %5615 = vst [vmem:[#allocation2 + $0xa0] sm:$0xff] %v5059_v25   ;;  %v2421_v37 = vmul.f32 0.01, %v1531_v27  ;;  %v1534_v39 = vadd.f32 %v6746_v48, %v1533_v35 }
 0x13a   :  { %5679 = vst [vmem:[#allocation2 + $0x2a0] sm:$0xff] %v5379_v26   ;;  %v2549_v38 = vmul.f32 0.01, %v2043_v28  ;;  %v2046_v40 = vadd.f32 %v6746_v48, %v2045_v36  ;;  %v2424_v41 = vmul.f32 0.01, %v1542_v33  ;;  %v2679_v45 = vmax.f32 %v1539_v21, %v2423_v31 }
 0x13b   :  { %v2552_v42 = vmul.f32 0.01, %v2054_v34  ;;  %v2422_v43 = vmul.f32 0.01, %v1534_v39  ;;  %v2807_v46 = vmax.f32 %v2051_v22, %v2551_v32  ;;  %v2677_v50 = vmax.f32 %v1531_v27, %v2421_v37  ;;  %v6921_v48 = vld [vmem:[%s7102_s2] ss:$0 sm:$0xff] }
 0x13c   :  { %v2550_v44 = vmul.f32 0.01, %v2046_v40  ;;  %v2680_v47 = vmax.f32 %v1542_v33, %v2424_v41  ;;  %v2805_v51 = vmax.f32 %v2043_v28, %v2549_v38 }
 0x13d   :  { %v2808_v49 = vmax.f32 %v2054_v34, %v2552_v42  ;;  %v2678_v52 = vmax.f32 %v1534_v39, %v2422_v43  ;;  %v5907_v54 = vpop.f32.mrb[48].mxu0  ;;  %v6035_v55 = vpop.f32.mrb[48].mxu1 }
 0x13e   :  { %v2806_v53 = vmax.f32 %v2046_v40, %v2550_v44  ;;  %v5074_v56 = vpack.c.bf16 %v2680_v47, %v2679_v45  ;;  %v1555_v58 = vadd.f32 %v6921_v48, %v5907_v54  ;;  %v2067_v59 = vadd.f32 %v6921_v48, %v6035_v55  ;;  %v1546_v60 = vpop.f32.mrb[49].mxu0  ;;  %v2058_v61 = vpop.f32.mrb[49].mxu1 }
 0x13f   :  { %v5394_v57 = vpack.c.bf16 %v2808_v49, %v2807_v46  ;;  %v5069_v62 = vpack.c.bf16 %v2678_v52, %v2677_v50  ;;  %v1547_v0 = vadd.f32 %v6921_v48, %v1546_v60  ;;  %v2059_v1 = vadd.f32 %v6921_v48, %v2058_v61  ;;  %v5908_v2 = vpop.f32.mrb[50].mxu0  ;;  %v6036_v3 = vpop.f32.mrb[50].mxu1 }
 0x140   :  { %v5389_v63 = vpack.c.bf16 %v2806_v53, %v2805_v51  ;;  %5618 = vst [vmem:[#allocation2 + $0xb8] sm:$0xff] %v5074_v56   ;;  %v2427_v4 = vmul.f32 0.01, %v1555_v58  ;;  %v2555_v5 = vmul.f32 0.01, %v2067_v59  ;;  %v1558_v6 = vadd.f32 %v6921_v48, %v5908_v2  ;;  %v1549_v8 = vpop.f32.mrb[51].mxu0 }
 0x141   :  { %5682 = vst [vmem:[#allocation2 + $0x2b8] sm:$0xff] %v5394_v57   ;;  %v2070_v7 = vadd.f32 %v6921_v48, %v6036_v3  ;;  %v2061_v9 = vpop.f32.mrb[51].mxu1  ;;  %5617 = vst [vmem:[#allocation2 + $0xb0] sm:$0xff] %v5069_v62   ;;  %v2425_v10 = vmul.f32 0.01, %v1547_v0  ;;  %v1550_v12 = vadd.f32 %v6921_v48, %v1549_v8 }
 0x142   :  { %5681 = vst [vmem:[#allocation2 + $0x2b0] sm:$0xff] %v5389_v63   ;;  %v2553_v11 = vmul.f32 0.01, %v2059_v1  ;;  %v2062_v13 = vadd.f32 %v6921_v48, %v2061_v9  ;;  %v2428_v14 = vmul.f32 0.01, %v1558_v6  ;;  %v2683_v18 = vmax.f32 %v1555_v58, %v2427_v4 }
 0x143   :  { %v2556_v15 = vmul.f32 0.01, %v2070_v7  ;;  %v2426_v16 = vmul.f32 0.01, %v1550_v12  ;;  %v2811_v19 = vmax.f32 %v2067_v59, %v2555_v5  ;;  %v2681_v22 = vmax.f32 %v1547_v0, %v2425_v10 }
 0x144   :  { %v2554_v17 = vmul.f32 0.01, %v2062_v13  ;;  %v2684_v20 = vmax.f32 %v1558_v6, %v2428_v14  ;;  %v2809_v23 = vmax.f32 %v2059_v1, %v2553_v11 }
 0x145   :  { %v2812_v21 = vmax.f32 %v2070_v7, %v2556_v15  ;;  %v2682_v24 = vmax.f32 %v1550_v12, %v2426_v16  ;;  %v5911_v26 = vpop.f32.mrb[52].mxu0  ;;  %v6039_v27 = vpop.f32.mrb[52].mxu1 }
 0x146   :  { %v2810_v25 = vmax.f32 %v2062_v13, %v2554_v17  ;;  %v5084_v28 = vpack.c.bf16 %v2684_v20, %v2683_v18  ;;  %v1571_v30 = vadd.f32 %v6921_v48, %v5911_v26  ;;  %v2083_v31 = vadd.f32 %v6921_v48, %v6039_v27  ;;  %v1562_v32 = vpop.f32.mrb[53].mxu0  ;;  %v2074_v33 = vpop.f32.mrb[53].mxu1 }
 0x147   :  { %v5404_v29 = vpack.c.bf16 %v2812_v21, %v2811_v19  ;;  %v5079_v34 = vpack.c.bf16 %v2682_v24, %v2681_v22  ;;  %v1563_v36 = vadd.f32 %v6921_v48, %v1562_v32  ;;  %v2075_v37 = vadd.f32 %v6921_v48, %v2074_v33  ;;  %v5912_v38 = vpop.f32.mrb[54].mxu0  ;;  %v6040_v39 = vpop.f32.mrb[54].mxu1 }
 0x148   :  { %v5399_v35 = vpack.c.bf16 %v2810_v25, %v2809_v23  ;;  %5620 = vst [vmem:[#allocation2 + $0xc8] sm:$0xff] %v5084_v28   ;;  %v2431_v40 = vmul.f32 0.01, %v1571_v30  ;;  %v2559_v41 = vmul.f32 0.01, %v2083_v31  ;;  %v1574_v42 = vadd.f32 %v6921_v48, %v5912_v38  ;;  %v1565_v44 = vpop.f32.mrb[55].mxu0 }
 0x149   :  { %5684 = vst [vmem:[#allocation2 + $0x2c8] sm:$0xff] %v5404_v29   ;;  %v2086_v43 = vadd.f32 %v6921_v48, %v6040_v39  ;;  %v2077_v45 = vpop.f32.mrb[55].mxu1  ;;  %5619 = vst [vmem:[#allocation2 + $0xc0] sm:$0xff] %v5079_v34   ;;  %v2429_v46 = vmul.f32 0.01, %v1563_v36  ;;  %v1566_v49 = vadd.f32 %v6921_v48, %v1565_v44 }
 0x14a   :  { %5683 = vst [vmem:[#allocation2 + $0x2c0] sm:$0xff] %v5399_v35   ;;  %v2557_v47 = vmul.f32 0.01, %v2075_v37  ;;  %v2078_v50 = vadd.f32 %v6921_v48, %v2077_v45  ;;  %v2432_v51 = vmul.f32 0.01, %v1574_v42  ;;  %v2687_v55 = vmax.f32 %v1571_v30, %v2431_v40 }
 0x14b   :  { %v2560_v52 = vmul.f32 0.01, %v2086_v43  ;;  %v2430_v53 = vmul.f32 0.01, %v1566_v49  ;;  %v2815_v56 = vmax.f32 %v2083_v31, %v2559_v41  ;;  %v2685_v59 = vmax.f32 %v1563_v36, %v2429_v46 }
 0x14c   :  { %v2558_v54 = vmul.f32 0.01, %v2078_v50  ;;  %v2688_v57 = vmax.f32 %v1574_v42, %v2432_v51  ;;  %v2813_v60 = vmax.f32 %v2075_v37, %v2557_v47 }
 0x14d   :  { %v2816_v58 = vmax.f32 %v2086_v43, %v2560_v52  ;;  %v2686_v61 = vmax.f32 %v1566_v49, %v2430_v53  ;;  %v5915_v63 = vpop.f32.mrb[56].mxu0  ;;  %v6043_v0 = vpop.f32.mrb[56].mxu1 }
 0x14e   :  { %v2814_v62 = vmax.f32 %v2078_v50, %v2558_v54  ;;  %v5094_v1 = vpack.c.bf16 %v2688_v57, %v2687_v55  ;;  %v1587_v3 = vadd.f32 %v6921_v48, %v5915_v63  ;;  %v2099_v4 = vadd.f32 %v6921_v48, %v6043_v0  ;;  %v1578_v5 = vpop.f32.mrb[57].mxu0  ;;  %v2090_v6 = vpop.f32.mrb[57].mxu1 }
 0x14f   :  { %v5414_v2 = vpack.c.bf16 %v2816_v58, %v2815_v56  ;;  %v5089_v7 = vpack.c.bf16 %v2686_v61, %v2685_v59  ;;  %v1579_v9 = vadd.f32 %v6921_v48, %v1578_v5  ;;  %v2091_v10 = vadd.f32 %v6921_v48, %v2090_v6  ;;  %v5916_v11 = vpop.f32.mrb[58].mxu0  ;;  %v6044_v12 = vpop.f32.mrb[58].mxu1 }
 0x150   :  { %v5409_v8 = vpack.c.bf16 %v2814_v62, %v2813_v60  ;;  %5622 = vst [vmem:[#allocation2 + $0xd8] sm:$0xff] %v5094_v1   ;;  %v2435_v13 = vmul.f32 0.01, %v1587_v3  ;;  %v2563_v14 = vmul.f32 0.01, %v2099_v4  ;;  %v1590_v15 = vadd.f32 %v6921_v48, %v5916_v11  ;;  %v1581_v17 = vpop.f32.mrb[59].mxu0 }
 0x151   :  { %5686 = vst [vmem:[#allocation2 + $0x2d8] sm:$0xff] %v5414_v2   ;;  %v2102_v16 = vadd.f32 %v6921_v48, %v6044_v12  ;;  %v2093_v18 = vpop.f32.mrb[59].mxu1  ;;  %5621 = vst [vmem:[#allocation2 + $0xd0] sm:$0xff] %v5089_v7   ;;  %v2433_v19 = vmul.f32 0.01, %v1579_v9  ;;  %v1582_v21 = vadd.f32 %v6921_v48, %v1581_v17 }
 0x152   :  { %5685 = vst [vmem:[#allocation2 + $0x2d0] sm:$0xff] %v5409_v8   ;;  %v2561_v20 = vmul.f32 0.01, %v2091_v10  ;;  %v2094_v22 = vadd.f32 %v6921_v48, %v2093_v18  ;;  %v2436_v23 = vmul.f32 0.01, %v1590_v15  ;;  %v2691_v27 = vmax.f32 %v1587_v3, %v2435_v13 }
 0x153   :  { %v2564_v24 = vmul.f32 0.01, %v2102_v16  ;;  %v2434_v25 = vmul.f32 0.01, %v1582_v21  ;;  %v2819_v28 = vmax.f32 %v2099_v4, %v2563_v14  ;;  %v2689_v31 = vmax.f32 %v1579_v9, %v2433_v19 }
 0x154   :  { %v2562_v26 = vmul.f32 0.01, %v2094_v22  ;;  %v2692_v29 = vmax.f32 %v1590_v15, %v2436_v23  ;;  %v2817_v32 = vmax.f32 %v2091_v10, %v2561_v20 }
 0x155   :  { %v2820_v30 = vmax.f32 %v2102_v16, %v2564_v24  ;;  %v2690_v33 = vmax.f32 %v1582_v21, %v2434_v25  ;;  %v5919_v35 = vpop.f32.mrb[60].mxu0  ;;  %v6047_v36 = vpop.f32.mrb[60].mxu1 }
 0x156   :  { %v2818_v34 = vmax.f32 %v2094_v22, %v2562_v26  ;;  %v5104_v37 = vpack.c.bf16 %v2692_v29, %v2691_v27  ;;  %v1603_v39 = vadd.f32 %v6921_v48, %v5919_v35  ;;  %v2115_v40 = vadd.f32 %v6921_v48, %v6047_v36  ;;  %v1594_v41 = vpop.f32.mrb[61].mxu0  ;;  %v2106_v42 = vpop.f32.mrb[61].mxu1 }
 0x157   :  { %v5424_v38 = vpack.c.bf16 %v2820_v30, %v2819_v28  ;;  %v5099_v43 = vpack.c.bf16 %v2690_v33, %v2689_v31  ;;  %v1595_v45 = vadd.f32 %v6921_v48, %v1594_v41  ;;  %v2107_v46 = vadd.f32 %v6921_v48, %v2106_v42  ;;  %v5920_v47 = vpop.f32.mrb[62].mxu0  ;;  %v6048_v49 = vpop.f32.mrb[62].mxu1 }
 0x158   :  { %v5419_v44 = vpack.c.bf16 %v2818_v34, %v2817_v32  ;;  %5624 = vst [vmem:[#allocation2 + $0xe8] sm:$0xff] %v5104_v37   ;;  %v2439_v50 = vmul.f32 0.01, %v1603_v39  ;;  %v2567_v51 = vmul.f32 0.01, %v2115_v40  ;;  %v1606_v52 = vadd.f32 %v6921_v48, %v5920_v47  ;;  %v1597_v54 = vpop.f32.mrb[63].mxu0 }
 0x159   :  { %5688 = vst [vmem:[#allocation2 + $0x2e8] sm:$0xff] %v5424_v38   ;;  %v2118_v53 = vadd.f32 %v6921_v48, %v6048_v49  ;;  %v2109_v55 = vpop.f32.mrb[63].mxu1  ;;  %5623 = vst [vmem:[#allocation2 + $0xe0] sm:$0xff] %v5099_v43   ;;  %v2437_v56 = vmul.f32 0.01, %v1595_v45  ;;  %v1598_v58 = vadd.f32 %v6921_v48, %v1597_v54 }
 0x15a   :  { %5687 = vst [vmem:[#allocation2 + $0x2e0] sm:$0xff] %v5419_v44   ;;  %v2565_v57 = vmul.f32 0.01, %v2107_v46  ;;  %v2110_v59 = vadd.f32 %v6921_v48, %v2109_v55  ;;  %v2440_v60 = vmul.f32 0.01, %v1606_v52  ;;  %v2695_v0 = vmax.f32 %v1603_v39, %v2439_v50 }
 0x15b   :  { %v2568_v61 = vmul.f32 0.01, %v2118_v53  ;;  %v2438_v62 = vmul.f32 0.01, %v1598_v58  ;;  %v2823_v1 = vmax.f32 %v2115_v40, %v2567_v51  ;;  %v2693_v4 = vmax.f32 %v1595_v45, %v2437_v56 }
 0x15c   :  { %v2566_v63 = vmul.f32 0.01, %v2110_v59  ;;  %v2696_v2 = vmax.f32 %v1606_v52, %v2440_v60  ;;  %v2821_v5 = vmax.f32 %v2107_v46, %v2565_v57 }
 0x15d   :  { %v2824_v3 = vmax.f32 %v2118_v53, %v2568_v61  ;;  %v2694_v6 = vmax.f32 %v1598_v58, %v2438_v62  ;;  %v5923_v8 = vpop.f32.mrb[64].mxu0  ;;  %v6051_v9 = vpop.f32.mrb[64].mxu1 }
 0x15e   :  { %v2822_v7 = vmax.f32 %v2110_v59, %v2566_v63  ;;  %v5114_v10 = vpack.c.bf16 %v2696_v2, %v2695_v0  ;;  %v1619_v12 = vadd.f32 %v6921_v48, %v5923_v8  ;;  %v2131_v13 = vadd.f32 %v6921_v48, %v6051_v9  ;;  %v1610_v14 = vpop.f32.mrb[65].mxu0  ;;  %v2122_v15 = vpop.f32.mrb[65].mxu1 }
 0x15f   :  { %v5434_v11 = vpack.c.bf16 %v2824_v3, %v2823_v1  ;;  %v5109_v16 = vpack.c.bf16 %v2694_v6, %v2693_v4  ;;  %v1611_v18 = vadd.f32 %v6921_v48, %v1610_v14  ;;  %v2123_v19 = vadd.f32 %v6921_v48, %v2122_v15  ;;  %v5924_v20 = vpop.f32.mrb[66].mxu0  ;;  %v6052_v21 = vpop.f32.mrb[66].mxu1 }
 0x160   :  { %v5429_v17 = vpack.c.bf16 %v2822_v7, %v2821_v5  ;;  %5626 = vst [vmem:[#allocation2 + $0xf8] sm:$0xff] %v5114_v10   ;;  %v2443_v22 = vmul.f32 0.01, %v1619_v12  ;;  %v2571_v23 = vmul.f32 0.01, %v2131_v13  ;;  %v1622_v24 = vadd.f32 %v6921_v48, %v5924_v20  ;;  %v1613_v26 = vpop.f32.mrb[67].mxu0 }
 0x161   :  { %5690 = vst [vmem:[#allocation2 + $0x2f8] sm:$0xff] %v5434_v11   ;;  %v2134_v25 = vadd.f32 %v6921_v48, %v6052_v21  ;;  %v2125_v27 = vpop.f32.mrb[67].mxu1  ;;  %5625 = vst [vmem:[#allocation2 + $0xf0] sm:$0xff] %v5109_v16   ;;  %v2441_v28 = vmul.f32 0.01, %v1611_v18  ;;  %v1614_v30 = vadd.f32 %v6921_v48, %v1613_v26 }
 0x162   :  { %5689 = vst [vmem:[#allocation2 + $0x2f0] sm:$0xff] %v5429_v17   ;;  %v2569_v29 = vmul.f32 0.01, %v2123_v19  ;;  %v2126_v31 = vadd.f32 %v6921_v48, %v2125_v27  ;;  %v2444_v32 = vmul.f32 0.01, %v1622_v24  ;;  %v2699_v36 = vmax.f32 %v1619_v12, %v2443_v22 }
 0x163   :  { %v2572_v33 = vmul.f32 0.01, %v2134_v25  ;;  %v2442_v34 = vmul.f32 0.01, %v1614_v30  ;;  %v2827_v37 = vmax.f32 %v2131_v13, %v2571_v23  ;;  %v2697_v40 = vmax.f32 %v1611_v18, %v2441_v28 }
 0x164   :  { %v2570_v35 = vmul.f32 0.01, %v2126_v31  ;;  %v2700_v38 = vmax.f32 %v1622_v24, %v2444_v32  ;;  %v2825_v41 = vmax.f32 %v2123_v19, %v2569_v29 }
 0x165   :  { %v2828_v39 = vmax.f32 %v2134_v25, %v2572_v33  ;;  %v2698_v42 = vmax.f32 %v1614_v30, %v2442_v34  ;;  %v5927_v44 = vpop.f32.mrb[68].mxu0  ;;  %v6055_v45 = vpop.f32.mrb[68].mxu1 }
 0x166   :  { %v2826_v43 = vmax.f32 %v2126_v31, %v2570_v35  ;;  %v5124_v46 = vpack.c.bf16 %v2700_v38, %v2699_v36  ;;  %v1635_v49 = vadd.f32 %v6921_v48, %v5927_v44  ;;  %v2147_v50 = vadd.f32 %v6921_v48, %v6055_v45  ;;  %v1626_v51 = vpop.f32.mrb[69].mxu0  ;;  %v2138_v52 = vpop.f32.mrb[69].mxu1 }
 0x167   :  { %v5444_v47 = vpack.c.bf16 %v2828_v39, %v2827_v37  ;;  %v5119_v53 = vpack.c.bf16 %v2698_v42, %v2697_v40  ;;  %v1627_v55 = vadd.f32 %v6921_v48, %v1626_v51  ;;  %v2139_v56 = vadd.f32 %v6921_v48, %v2138_v52  ;;  %v5928_v57 = vpop.f32.mrb[70].mxu0  ;;  %v6056_v58 = vpop.f32.mrb[70].mxu1 }
 0x168   :  { %v5439_v54 = vpack.c.bf16 %v2826_v43, %v2825_v41  ;;  %5628 = vst [vmem:[#allocation2 + $0x108] sm:$0xff] %v5124_v46   ;;  %v2447_v59 = vmul.f32 0.01, %v1635_v49  ;;  %v2575_v60 = vmul.f32 0.01, %v2147_v50  ;;  %v1638_v61 = vadd.f32 %v6921_v48, %v5928_v57  ;;  %v1629_v63 = vpop.f32.mrb[71].mxu0 }
 0x169   :  { %5692 = vst [vmem:[#allocation2 + $0x308] sm:$0xff] %v5444_v47   ;;  %v2150_v62 = vadd.f32 %v6921_v48, %v6056_v58  ;;  %v2141_v0 = vpop.f32.mrb[71].mxu1  ;;  %5627 = vst [vmem:[#allocation2 + $0x100] sm:$0xff] %v5119_v53   ;;  %v2445_v1 = vmul.f32 0.01, %v1627_v55  ;;  %v1630_v3 = vadd.f32 %v6921_v48, %v1629_v63 }
 0x16a   :  { %5691 = vst [vmem:[#allocation2 + $0x300] sm:$0xff] %v5439_v54   ;;  %v2573_v2 = vmul.f32 0.01, %v2139_v56  ;;  %v2142_v4 = vadd.f32 %v6921_v48, %v2141_v0  ;;  %v2448_v5 = vmul.f32 0.01, %v1638_v61  ;;  %v2703_v9 = vmax.f32 %v1635_v49, %v2447_v59 }
 0x16b   :  { %v2576_v6 = vmul.f32 0.01, %v2150_v62  ;;  %v2446_v7 = vmul.f32 0.01, %v1630_v3  ;;  %v2831_v10 = vmax.f32 %v2147_v50, %v2575_v60  ;;  %v2701_v13 = vmax.f32 %v1627_v55, %v2445_v1 }
 0x16c   :  { %v2574_v8 = vmul.f32 0.01, %v2142_v4  ;;  %v2704_v11 = vmax.f32 %v1638_v61, %v2448_v5  ;;  %v2829_v14 = vmax.f32 %v2139_v56, %v2573_v2 }
 0x16d   :  { %v2832_v12 = vmax.f32 %v2150_v62, %v2576_v6  ;;  %v2702_v15 = vmax.f32 %v1630_v3, %v2446_v7  ;;  %v5931_v17 = vpop.f32.mrb[72].mxu0  ;;  %v6059_v18 = vpop.f32.mrb[72].mxu1 }
 0x16e   :  { %v2830_v16 = vmax.f32 %v2142_v4, %v2574_v8  ;;  %v5134_v19 = vpack.c.bf16 %v2704_v11, %v2703_v9  ;;  %v1651_v21 = vadd.f32 %v6921_v48, %v5931_v17  ;;  %v2163_v22 = vadd.f32 %v6921_v48, %v6059_v18  ;;  %v1642_v23 = vpop.f32.mrb[73].mxu0  ;;  %v2154_v24 = vpop.f32.mrb[73].mxu1 }
 0x16f   :  { %v5454_v20 = vpack.c.bf16 %v2832_v12, %v2831_v10  ;;  %v5129_v25 = vpack.c.bf16 %v2702_v15, %v2701_v13  ;;  %v1643_v27 = vadd.f32 %v6921_v48, %v1642_v23  ;;  %v2155_v28 = vadd.f32 %v6921_v48, %v2154_v24  ;;  %v5932_v29 = vpop.f32.mrb[74].mxu0  ;;  %v6060_v30 = vpop.f32.mrb[74].mxu1 }
 0x170   :  { %v5449_v26 = vpack.c.bf16 %v2830_v16, %v2829_v14  ;;  %5630 = vst [vmem:[#allocation2 + $0x118] sm:$0xff] %v5134_v19   ;;  %v2451_v31 = vmul.f32 0.01, %v1651_v21  ;;  %v2579_v32 = vmul.f32 0.01, %v2163_v22  ;;  %v1654_v33 = vadd.f32 %v6921_v48, %v5932_v29  ;;  %v1645_v35 = vpop.f32.mrb[75].mxu0 }
 0x171   :  { %5694 = vst [vmem:[#allocation2 + $0x318] sm:$0xff] %v5454_v20   ;;  %v2166_v34 = vadd.f32 %v6921_v48, %v6060_v30  ;;  %v2157_v36 = vpop.f32.mrb[75].mxu1  ;;  %5629 = vst [vmem:[#allocation2 + $0x110] sm:$0xff] %v5129_v25   ;;  %v2449_v37 = vmul.f32 0.01, %v1643_v27  ;;  %v1646_v39 = vadd.f32 %v6921_v48, %v1645_v35 }
 0x172   :  { %5693 = vst [vmem:[#allocation2 + $0x310] sm:$0xff] %v5449_v26   ;;  %v2577_v38 = vmul.f32 0.01, %v2155_v28  ;;  %v2158_v40 = vadd.f32 %v6921_v48, %v2157_v36  ;;  %v2452_v41 = vmul.f32 0.01, %v1654_v33  ;;  %v2707_v45 = vmax.f32 %v1651_v21, %v2451_v31 }
 0x173   :  { %v2580_v42 = vmul.f32 0.01, %v2166_v34  ;;  %v2450_v43 = vmul.f32 0.01, %v1646_v39  ;;  %v2835_v46 = vmax.f32 %v2163_v22, %v2579_v32  ;;  %v2705_v50 = vmax.f32 %v1643_v27, %v2449_v37 }
 0x174   :  { %v2578_v44 = vmul.f32 0.01, %v2158_v40  ;;  %v2708_v47 = vmax.f32 %v1654_v33, %v2452_v41  ;;  %v2833_v51 = vmax.f32 %v2155_v28, %v2577_v38 }
 0x175   :  { %v2836_v49 = vmax.f32 %v2166_v34, %v2580_v42  ;;  %v2706_v52 = vmax.f32 %v1646_v39, %v2450_v43  ;;  %v5935_v54 = vpop.f32.mrb[76].mxu0  ;;  %v6063_v55 = vpop.f32.mrb[76].mxu1 }
 0x176   :  { %v2834_v53 = vmax.f32 %v2158_v40, %v2578_v44  ;;  %v5144_v56 = vpack.c.bf16 %v2708_v47, %v2707_v45  ;;  %v1667_v58 = vadd.f32 %v6921_v48, %v5935_v54  ;;  %v2179_v59 = vadd.f32 %v6921_v48, %v6063_v55  ;;  %v1658_v60 = vpop.f32.mrb[77].mxu0  ;;  %v2170_v61 = vpop.f32.mrb[77].mxu1 }
 0x177   :  { %v5464_v57 = vpack.c.bf16 %v2836_v49, %v2835_v46  ;;  %v5139_v62 = vpack.c.bf16 %v2706_v52, %v2705_v50  ;;  %v1659_v0 = vadd.f32 %v6921_v48, %v1658_v60  ;;  %v2171_v1 = vadd.f32 %v6921_v48, %v2170_v61  ;;  %v5936_v2 = vpop.f32.mrb[78].mxu0  ;;  %v6064_v3 = vpop.f32.mrb[78].mxu1 }
 0x178   :  { %v5459_v63 = vpack.c.bf16 %v2834_v53, %v2833_v51  ;;  %5632 = vst [vmem:[#allocation2 + $0x128] sm:$0xff] %v5144_v56   ;;  %v2455_v4 = vmul.f32 0.01, %v1667_v58  ;;  %v2583_v5 = vmul.f32 0.01, %v2179_v59  ;;  %v1670_v6 = vadd.f32 %v6921_v48, %v5936_v2  ;;  %v1661_v8 = vpop.f32.mrb[79].mxu0 }
 0x179   :  { %5696 = vst [vmem:[#allocation2 + $0x328] sm:$0xff] %v5464_v57   ;;  %v2182_v7 = vadd.f32 %v6921_v48, %v6064_v3  ;;  %v2173_v9 = vpop.f32.mrb[79].mxu1  ;;  %5631 = vst [vmem:[#allocation2 + $0x120] sm:$0xff] %v5139_v62   ;;  %v2453_v10 = vmul.f32 0.01, %v1659_v0  ;;  %v1662_v12 = vadd.f32 %v6921_v48, %v1661_v8 }
 0x17a   :  { %5695 = vst [vmem:[#allocation2 + $0x320] sm:$0xff] %v5459_v63   ;;  %v2581_v11 = vmul.f32 0.01, %v2171_v1  ;;  %v2174_v13 = vadd.f32 %v6921_v48, %v2173_v9  ;;  %v2456_v14 = vmul.f32 0.01, %v1670_v6  ;;  %v2711_v18 = vmax.f32 %v1667_v58, %v2455_v4 }
 0x17b   :  { %v2584_v15 = vmul.f32 0.01, %v2182_v7  ;;  %v2454_v16 = vmul.f32 0.01, %v1662_v12  ;;  %v2839_v19 = vmax.f32 %v2179_v59, %v2583_v5  ;;  %v2709_v22 = vmax.f32 %v1659_v0, %v2453_v10 }
 0x17c   :  { %v2582_v17 = vmul.f32 0.01, %v2174_v13  ;;  %v2712_v20 = vmax.f32 %v1670_v6, %v2456_v14  ;;  %v2837_v23 = vmax.f32 %v2171_v1, %v2581_v11 }
 0x17d   :  { %v2840_v21 = vmax.f32 %v2182_v7, %v2584_v15  ;;  %v2710_v24 = vmax.f32 %v1662_v12, %v2454_v16  ;;  %v5939_v26 = vpop.f32.mrb[80].mxu0  ;;  %v6067_v27 = vpop.f32.mrb[80].mxu1 }
 0x17e   :  { %v2838_v25 = vmax.f32 %v2174_v13, %v2582_v17  ;;  %v5154_v28 = vpack.c.bf16 %v2712_v20, %v2711_v18  ;;  %v1683_v30 = vadd.f32 %v6921_v48, %v5939_v26  ;;  %v2195_v31 = vadd.f32 %v6921_v48, %v6067_v27  ;;  %v1674_v32 = vpop.f32.mrb[81].mxu0  ;;  %v2186_v33 = vpop.f32.mrb[81].mxu1 }
 0x17f   :  { %v5474_v29 = vpack.c.bf16 %v2840_v21, %v2839_v19  ;;  %v5149_v34 = vpack.c.bf16 %v2710_v24, %v2709_v22  ;;  %v1675_v36 = vadd.f32 %v6921_v48, %v1674_v32  ;;  %v2187_v37 = vadd.f32 %v6921_v48, %v2186_v33  ;;  %v5940_v38 = vpop.f32.mrb[82].mxu0  ;;  %v6068_v39 = vpop.f32.mrb[82].mxu1 }
 0x180   :  { %v5469_v35 = vpack.c.bf16 %v2838_v25, %v2837_v23  ;;  %5634 = vst [vmem:[#allocation2 + $0x138] sm:$0xff] %v5154_v28   ;;  %v2459_v40 = vmul.f32 0.01, %v1683_v30  ;;  %v2587_v41 = vmul.f32 0.01, %v2195_v31  ;;  %v1686_v42 = vadd.f32 %v6921_v48, %v5940_v38  ;;  %v1677_v44 = vpop.f32.mrb[83].mxu0 }
 0x181   :  { %5698 = vst [vmem:[#allocation2 + $0x338] sm:$0xff] %v5474_v29   ;;  %v2198_v43 = vadd.f32 %v6921_v48, %v6068_v39  ;;  %v2189_v45 = vpop.f32.mrb[83].mxu1  ;;  %5633 = vst [vmem:[#allocation2 + $0x130] sm:$0xff] %v5149_v34   ;;  %v2457_v46 = vmul.f32 0.01, %v1675_v36  ;;  %v1678_v49 = vadd.f32 %v6921_v48, %v1677_v44 }
 0x182   :  { %5697 = vst [vmem:[#allocation2 + $0x330] sm:$0xff] %v5469_v35   ;;  %v2585_v47 = vmul.f32 0.01, %v2187_v37  ;;  %v2190_v50 = vadd.f32 %v6921_v48, %v2189_v45  ;;  %v2460_v51 = vmul.f32 0.01, %v1686_v42  ;;  %v2715_v55 = vmax.f32 %v1683_v30, %v2459_v40 }
 0x183   :  { %v2588_v52 = vmul.f32 0.01, %v2198_v43  ;;  %v2458_v53 = vmul.f32 0.01, %v1678_v49  ;;  %v2843_v56 = vmax.f32 %v2195_v31, %v2587_v41  ;;  %v2713_v59 = vmax.f32 %v1675_v36, %v2457_v46 }
 0x184   :  { %v2586_v54 = vmul.f32 0.01, %v2190_v50  ;;  %v2716_v57 = vmax.f32 %v1686_v42, %v2460_v51  ;;  %v2841_v60 = vmax.f32 %v2187_v37, %v2585_v47 }
 0x185   :  { %v2844_v58 = vmax.f32 %v2198_v43, %v2588_v52  ;;  %v2714_v61 = vmax.f32 %v1678_v49, %v2458_v53  ;;  %v5943_v63 = vpop.f32.mrb[84].mxu0  ;;  %v6071_v0 = vpop.f32.mrb[84].mxu1 }
 0x186   :  { %v2842_v62 = vmax.f32 %v2190_v50, %v2586_v54  ;;  %v5164_v1 = vpack.c.bf16 %v2716_v57, %v2715_v55  ;;  %v1699_v3 = vadd.f32 %v6921_v48, %v5943_v63  ;;  %v2211_v4 = vadd.f32 %v6921_v48, %v6071_v0  ;;  %v1690_v5 = vpop.f32.mrb[85].mxu0  ;;  %v2202_v6 = vpop.f32.mrb[85].mxu1 }
 0x187   :  { %v5484_v2 = vpack.c.bf16 %v2844_v58, %v2843_v56  ;;  %v5159_v7 = vpack.c.bf16 %v2714_v61, %v2713_v59  ;;  %v1691_v9 = vadd.f32 %v6921_v48, %v1690_v5  ;;  %v2203_v10 = vadd.f32 %v6921_v48, %v2202_v6  ;;  %v5944_v11 = vpop.f32.mrb[86].mxu0  ;;  %v6072_v12 = vpop.f32.mrb[86].mxu1 }
 0x188   :  { %v5479_v8 = vpack.c.bf16 %v2842_v62, %v2841_v60  ;;  %5636 = vst [vmem:[#allocation2 + $0x148] sm:$0xff] %v5164_v1   ;;  %v2463_v13 = vmul.f32 0.01, %v1699_v3  ;;  %v2591_v14 = vmul.f32 0.01, %v2211_v4  ;;  %v1702_v15 = vadd.f32 %v6921_v48, %v5944_v11  ;;  %v1693_v17 = vpop.f32.mrb[87].mxu0 }
 0x189   :  { %5700 = vst [vmem:[#allocation2 + $0x348] sm:$0xff] %v5484_v2   ;;  %v2214_v16 = vadd.f32 %v6921_v48, %v6072_v12  ;;  %v2205_v18 = vpop.f32.mrb[87].mxu1  ;;  %5635 = vst [vmem:[#allocation2 + $0x140] sm:$0xff] %v5159_v7   ;;  %v2461_v19 = vmul.f32 0.01, %v1691_v9  ;;  %v1694_v21 = vadd.f32 %v6921_v48, %v1693_v17 }
 0x18a   :  { %5699 = vst [vmem:[#allocation2 + $0x340] sm:$0xff] %v5479_v8   ;;  %v2589_v20 = vmul.f32 0.01, %v2203_v10  ;;  %v2206_v22 = vadd.f32 %v6921_v48, %v2205_v18  ;;  %v2464_v23 = vmul.f32 0.01, %v1702_v15  ;;  %v2719_v27 = vmax.f32 %v1699_v3, %v2463_v13 }
 0x18b   :  { %v2592_v24 = vmul.f32 0.01, %v2214_v16  ;;  %v2462_v25 = vmul.f32 0.01, %v1694_v21  ;;  %v2847_v28 = vmax.f32 %v2211_v4, %v2591_v14  ;;  %v2717_v31 = vmax.f32 %v1691_v9, %v2461_v19 }
 0x18c   :  { %v2590_v26 = vmul.f32 0.01, %v2206_v22  ;;  %v2720_v29 = vmax.f32 %v1702_v15, %v2464_v23  ;;  %v2845_v32 = vmax.f32 %v2203_v10, %v2589_v20 }
 0x18d   :  { %v2848_v30 = vmax.f32 %v2214_v16, %v2592_v24  ;;  %v2718_v33 = vmax.f32 %v1694_v21, %v2462_v25  ;;  %v5947_v35 = vpop.f32.mrb[88].mxu0  ;;  %v6075_v36 = vpop.f32.mrb[88].mxu1 }
 0x18e   :  { %v2846_v34 = vmax.f32 %v2206_v22, %v2590_v26  ;;  %v5174_v37 = vpack.c.bf16 %v2720_v29, %v2719_v27  ;;  %v1715_v39 = vadd.f32 %v6921_v48, %v5947_v35  ;;  %v2227_v40 = vadd.f32 %v6921_v48, %v6075_v36  ;;  %v1706_v41 = vpop.f32.mrb[89].mxu0  ;;  %v2218_v42 = vpop.f32.mrb[89].mxu1 }
 0x18f   :  { %v5494_v38 = vpack.c.bf16 %v2848_v30, %v2847_v28  ;;  %v5169_v43 = vpack.c.bf16 %v2718_v33, %v2717_v31  ;;  %v1707_v45 = vadd.f32 %v6921_v48, %v1706_v41  ;;  %v2219_v46 = vadd.f32 %v6921_v48, %v2218_v42  ;;  %v5948_v47 = vpop.f32.mrb[90].mxu0  ;;  %v6076_v49 = vpop.f32.mrb[90].mxu1 }
 0x190   :  { %v5489_v44 = vpack.c.bf16 %v2846_v34, %v2845_v32  ;;  %5638 = vst [vmem:[#allocation2 + $0x158] sm:$0xff] %v5174_v37   ;;  %v2467_v50 = vmul.f32 0.01, %v1715_v39  ;;  %v2595_v51 = vmul.f32 0.01, %v2227_v40  ;;  %v1718_v52 = vadd.f32 %v6921_v48, %v5948_v47  ;;  %v1709_v54 = vpop.f32.mrb[91].mxu0 }
 0x191   :  { %5702 = vst [vmem:[#allocation2 + $0x358] sm:$0xff] %v5494_v38   ;;  %v2230_v53 = vadd.f32 %v6921_v48, %v6076_v49  ;;  %v2221_v55 = vpop.f32.mrb[91].mxu1  ;;  %5637 = vst [vmem:[#allocation2 + $0x150] sm:$0xff] %v5169_v43   ;;  %v2465_v56 = vmul.f32 0.01, %v1707_v45  ;;  %v1710_v58 = vadd.f32 %v6921_v48, %v1709_v54 }
 0x192   :  { %5701 = vst [vmem:[#allocation2 + $0x350] sm:$0xff] %v5489_v44   ;;  %v2593_v57 = vmul.f32 0.01, %v2219_v46  ;;  %v2222_v59 = vadd.f32 %v6921_v48, %v2221_v55  ;;  %v2468_v60 = vmul.f32 0.01, %v1718_v52  ;;  %v2723_v0 = vmax.f32 %v1715_v39, %v2467_v50 }
 0x193   :  { %v2596_v61 = vmul.f32 0.01, %v2230_v53  ;;  %v2466_v62 = vmul.f32 0.01, %v1710_v58  ;;  %v2851_v1 = vmax.f32 %v2227_v40, %v2595_v51  ;;  %v2721_v4 = vmax.f32 %v1707_v45, %v2465_v56 }
 0x194   :  { %v2594_v63 = vmul.f32 0.01, %v2222_v59  ;;  %v2724_v2 = vmax.f32 %v1718_v52, %v2468_v60  ;;  %v2849_v5 = vmax.f32 %v2219_v46, %v2593_v57 }
 0x195   :  { %v2852_v3 = vmax.f32 %v2230_v53, %v2596_v61  ;;  %v2722_v6 = vmax.f32 %v1710_v58, %v2466_v62  ;;  %v5951_v8 = vpop.f32.mrb[92].mxu0  ;;  %v6079_v9 = vpop.f32.mrb[92].mxu1 }
 0x196   :  { %v2850_v7 = vmax.f32 %v2222_v59, %v2594_v63  ;;  %v5184_v10 = vpack.c.bf16 %v2724_v2, %v2723_v0  ;;  %v1731_v12 = vadd.f32 %v6921_v48, %v5951_v8  ;;  %v2243_v13 = vadd.f32 %v6921_v48, %v6079_v9  ;;  %v1722_v14 = vpop.f32.mrb[93].mxu0  ;;  %v2234_v15 = vpop.f32.mrb[93].mxu1 }
 0x197   :  { %v5504_v11 = vpack.c.bf16 %v2852_v3, %v2851_v1  ;;  %v5179_v16 = vpack.c.bf16 %v2722_v6, %v2721_v4  ;;  %v1723_v18 = vadd.f32 %v6921_v48, %v1722_v14  ;;  %v2235_v19 = vadd.f32 %v6921_v48, %v2234_v15  ;;  %v5952_v20 = vpop.f32.mrb[94].mxu0  ;;  %v6080_v21 = vpop.f32.mrb[94].mxu1 }
 0x198   :  { %v5499_v17 = vpack.c.bf16 %v2850_v7, %v2849_v5  ;;  %5640 = vst [vmem:[#allocation2 + $0x168] sm:$0xff] %v5184_v10   ;;  %v2471_v22 = vmul.f32 0.01, %v1731_v12  ;;  %v2599_v23 = vmul.f32 0.01, %v2243_v13  ;;  %v1734_v24 = vadd.f32 %v6921_v48, %v5952_v20  ;;  %v1725_v26 = vpop.f32.mrb[95].mxu0 }
 0x199   :  { %5704 = vst [vmem:[#allocation2 + $0x368] sm:$0xff] %v5504_v11   ;;  %v2246_v25 = vadd.f32 %v6921_v48, %v6080_v21  ;;  %v2237_v27 = vpop.f32.mrb[95].mxu1  ;;  %5639 = vst [vmem:[#allocation2 + $0x160] sm:$0xff] %v5179_v16   ;;  %v2469_v28 = vmul.f32 0.01, %v1723_v18  ;;  %v1726_v30 = vadd.f32 %v6921_v48, %v1725_v26 }
 0x19a   :  { %5703 = vst [vmem:[#allocation2 + $0x360] sm:$0xff] %v5499_v17   ;;  %v2597_v29 = vmul.f32 0.01, %v2235_v19  ;;  %v2238_v31 = vadd.f32 %v6921_v48, %v2237_v27  ;;  %v2472_v32 = vmul.f32 0.01, %v1734_v24  ;;  %v2727_v36 = vmax.f32 %v1731_v12, %v2471_v22 }
 0x19b   :  { %v2600_v33 = vmul.f32 0.01, %v2246_v25  ;;  %v2470_v34 = vmul.f32 0.01, %v1726_v30  ;;  %v2855_v37 = vmax.f32 %v2243_v13, %v2599_v23  ;;  %v2725_v40 = vmax.f32 %v1723_v18, %v2469_v28 }
 0x19c   :  { %v2598_v35 = vmul.f32 0.01, %v2238_v31  ;;  %v2728_v38 = vmax.f32 %v1734_v24, %v2472_v32  ;;  %v2853_v41 = vmax.f32 %v2235_v19, %v2597_v29 }
 0x19d   :  { %v2856_v39 = vmax.f32 %v2246_v25, %v2600_v33  ;;  %v2726_v42 = vmax.f32 %v1726_v30, %v2470_v34  ;;  %v5955_v44 = vpop.f32.mrb[96].mxu0  ;;  %v6083_v45 = vpop.f32.mrb[96].mxu1 }
 0x19e   :  { %v2854_v43 = vmax.f32 %v2238_v31, %v2598_v35  ;;  %v5194_v46 = vpack.c.bf16 %v2728_v38, %v2727_v36  ;;  %v1747_v49 = vadd.f32 %v6921_v48, %v5955_v44  ;;  %v2259_v50 = vadd.f32 %v6921_v48, %v6083_v45  ;;  %v1738_v51 = vpop.f32.mrb[97].mxu0  ;;  %v2250_v52 = vpop.f32.mrb[97].mxu1 }
 0x19f   :  { %v5514_v47 = vpack.c.bf16 %v2856_v39, %v2855_v37  ;;  %v5189_v53 = vpack.c.bf16 %v2726_v42, %v2725_v40  ;;  %v1739_v55 = vadd.f32 %v6921_v48, %v1738_v51  ;;  %v2251_v56 = vadd.f32 %v6921_v48, %v2250_v52  ;;  %v5956_v57 = vpop.f32.mrb[98].mxu0  ;;  %v6084_v58 = vpop.f32.mrb[98].mxu1 }
 0x1a0   :  { %v5509_v54 = vpack.c.bf16 %v2854_v43, %v2853_v41  ;;  %5642 = vst [vmem:[#allocation2 + $0x178] sm:$0xff] %v5194_v46   ;;  %v2475_v59 = vmul.f32 0.01, %v1747_v49  ;;  %v2603_v60 = vmul.f32 0.01, %v2259_v50  ;;  %v1750_v61 = vadd.f32 %v6921_v48, %v5956_v57  ;;  %v1741_v63 = vpop.f32.mrb[99].mxu0 }
 0x1a1   :  { %5706 = vst [vmem:[#allocation2 + $0x378] sm:$0xff] %v5514_v47   ;;  %v2262_v62 = vadd.f32 %v6921_v48, %v6084_v58  ;;  %v2253_v0 = vpop.f32.mrb[99].mxu1  ;;  %5641 = vst [vmem:[#allocation2 + $0x170] sm:$0xff] %v5189_v53   ;;  %v2473_v1 = vmul.f32 0.01, %v1739_v55  ;;  %v1742_v3 = vadd.f32 %v6921_v48, %v1741_v63 }
 0x1a2   :  { %5705 = vst [vmem:[#allocation2 + $0x370] sm:$0xff] %v5509_v54   ;;  %v2601_v2 = vmul.f32 0.01, %v2251_v56  ;;  %v2254_v4 = vadd.f32 %v6921_v48, %v2253_v0  ;;  %v2476_v5 = vmul.f32 0.01, %v1750_v61  ;;  %v2731_v9 = vmax.f32 %v1747_v49, %v2475_v59 }
 0x1a3   :  { %v2604_v6 = vmul.f32 0.01, %v2262_v62  ;;  %v2474_v7 = vmul.f32 0.01, %v1742_v3  ;;  %v2859_v10 = vmax.f32 %v2259_v50, %v2603_v60  ;;  %v2729_v13 = vmax.f32 %v1739_v55, %v2473_v1  ;;  %v7030_v48 = vld [vmem:[%s7102_s2] ss:$0 sm:$0xff] }
 0x1a4   :  { %v2602_v8 = vmul.f32 0.01, %v2254_v4  ;;  %v2732_v11 = vmax.f32 %v1750_v61, %v2476_v5  ;;  %v2857_v14 = vmax.f32 %v2251_v56, %v2601_v2  ;;  %s6276_s2 = smov [#allocation2]  }
 0x1a5   :  { %v2860_v12 = vmax.f32 %v2262_v62, %v2604_v6  ;;  %v2730_v15 = vmax.f32 %v1742_v3, %v2474_v7  ;;  %v5959_v17 = vpop.f32.mrb[100].mxu0  ;;  %v6087_v18 = vpop.f32.mrb[100].mxu1  ;;  %s4174_s24 = sshll.u32 %s6276_s2, 4  ;;  %s4175_s24 = int_to_ptr.vmem [resolvable:$true] %s4174_s24 }
 0x1a6   :  { %v2858_v16 = vmax.f32 %v2254_v4, %v2602_v8  ;;  %v5204_v19 = vpack.c.bf16 %v2732_v11, %v2731_v9  ;;  %v1763_v21 = vadd.f32 %v7030_v48, %v5959_v17  ;;  %v2275_v22 = vadd.f32 %v7030_v48, %v6087_v18  ;;  %v1754_v23 = vpop.f32.mrb[101].mxu0  ;;  %v2266_v24 = vpop.f32.mrb[101].mxu1  ;;  %s6252_s25 = scalar_lea.vmem %s4175_s24, 16384  ;;  %p6257_p1 = scmp.lt.s32.totalorder %s4175_s24, %s4175_s24 }
 0x1a7   :  { %v5524_v20 = vpack.c.bf16 %v2860_v12, %v2859_v10  ;;  %v5199_v25 = vpack.c.bf16 %v2730_v15, %v2729_v13  ;;  %v1755_v27 = vadd.f32 %v7030_v48, %v1754_v23  ;;  %v2267_v28 = vadd.f32 %v7030_v48, %v2266_v24  ;;  %v5960_v29 = vpop.f32.mrb[102].mxu0  ;;  %v6088_v30 = vpop.f32.mrb[102].mxu1  ;;  %p6253_p0 = scmp.ne.s32.totalorder %s4175_s24, %s6252_s25  ;;  %p6258_p2 = scmp.lt.s32.totalorder %s6252_s25, %s6252_s25 }
 0x1a8   :  { %v5519_v26 = vpack.c.bf16 %v2858_v16, %v2857_v14  ;;  %5644 = vst [vmem:[#allocation2 + $0x188] sm:$0xff] %v5204_v19   ;;  %v2479_v31 = vmul.f32 0.01, %v1763_v21  ;;  %v2607_v32 = vmul.f32 0.01, %v2275_v22  ;;  %v1766_v33 = vadd.f32 %v7030_v48, %v5960_v29  ;;  %v1757_v35 = vpop.f32.mrb[103].mxu0 }
 0x1a9   :  { %5708 = vst [vmem:[#allocation2 + $0x388] sm:$0xff] %v5524_v20   ;;  %v2278_v34 = vadd.f32 %v7030_v48, %v6088_v30  ;;  %v2269_v36 = vpop.f32.mrb[103].mxu1  ;;  %5643 = vst [vmem:[#allocation2 + $0x180] sm:$0xff] %v5199_v25   ;;  %v2477_v37 = vmul.f32 0.01, %v1755_v27  ;;  %v1758_v39 = vadd.f32 %v7030_v48, %v1757_v35  ;;  %p6259_p3 = por %p6258_p2, %p6257_p1 }
 0x1aa   :  { %5707 = vst [vmem:[#allocation2 + $0x380] sm:$0xff] %v5519_v26   ;;  %v2605_v38 = vmul.f32 0.01, %v2267_v28  ;;  %v2270_v40 = vadd.f32 %v7030_v48, %v2269_v36  ;;  %v2480_v41 = vmul.f32 0.01, %v1766_v33  ;;  %v2735_v45 = vmax.f32 %v1763_v21, %v2479_v31 }
 0x1ab   :  { %v2608_v42 = vmul.f32 0.01, %v2278_v34  ;;  %v2478_v43 = vmul.f32 0.01, %v1758_v39  ;;  %v2863_v46 = vmax.f32 %v2275_v22, %v2607_v32  ;;  %v2733_v50 = vmax.f32 %v1755_v27, %v2477_v37  ;;  %p6260_p4 = pnand %p6259_p3, %p6253_p0 }
 0x1ac   :  { %v2606_v44 = vmul.f32 0.01, %v2270_v40  ;;  %v2736_v47 = vmax.f32 %v1766_v33, %v2480_v41  ;;  %v2861_v51 = vmax.f32 %v2267_v28, %v2605_v38 }
 0x1ad   :  { %v2864_v49 = vmax.f32 %v2278_v34, %v2608_v42  ;;  %v2734_v52 = vmax.f32 %v1758_v39, %v2478_v43  ;;  %v5963_v54 = vpop.f32.mrb[104].mxu0  ;;  %v6091_v55 = vpop.f32.mrb[104].mxu1 }
 0x1ae   :  { %v2862_v53 = vmax.f32 %v2270_v40, %v2606_v44  ;;  %v5214_v56 = vpack.c.bf16 %v2736_v47, %v2735_v45  ;;  %v1779_v58 = vadd.f32 %v7030_v48, %v5963_v54  ;;  %v2291_v59 = vadd.f32 %v7030_v48, %v6091_v55  ;;  %v1770_v60 = vpop.f32.mrb[105].mxu0  ;;  %v2282_v61 = vpop.f32.mrb[105].mxu1 }
 0x1af   :  { %v5534_v57 = vpack.c.bf16 %v2864_v49, %v2863_v46  ;;  %v5209_v62 = vpack.c.bf16 %v2734_v52, %v2733_v50  ;;  %v1771_v0 = vadd.f32 %v7030_v48, %v1770_v60  ;;  %v2283_v1 = vadd.f32 %v7030_v48, %v2282_v61  ;;  %v5964_v2 = vpop.f32.mrb[106].mxu0  ;;  %v6092_v3 = vpop.f32.mrb[106].mxu1 }
 0x1b0   :  { %v5529_v63 = vpack.c.bf16 %v2862_v53, %v2861_v51  ;;  %5646 = vst [vmem:[#allocation2 + $0x198] sm:$0xff] %v5214_v56   ;;  %v2483_v4 = vmul.f32 0.01, %v1779_v58  ;;  %v2611_v5 = vmul.f32 0.01, %v2291_v59  ;;  %v1782_v6 = vadd.f32 %v7030_v48, %v5964_v2  ;;  %v1773_v8 = vpop.f32.mrb[107].mxu0 }
 0x1b1   :  { %5710 = vst [vmem:[#allocation2 + $0x398] sm:$0xff] %v5534_v57   ;;  %v2294_v7 = vadd.f32 %v7030_v48, %v6092_v3  ;;  %v2285_v9 = vpop.f32.mrb[107].mxu1  ;;  %5645 = vst [vmem:[#allocation2 + $0x190] sm:$0xff] %v5209_v62   ;;  %v2481_v10 = vmul.f32 0.01, %v1771_v0  ;;  %v1774_v12 = vadd.f32 %v7030_v48, %v1773_v8 }
 0x1b2   :  { %5709 = vst [vmem:[#allocation2 + $0x390] sm:$0xff] %v5529_v63   ;;  %v2609_v11 = vmul.f32 0.01, %v2283_v1  ;;  %v2286_v13 = vadd.f32 %v7030_v48, %v2285_v9  ;;  %v2484_v14 = vmul.f32 0.01, %v1782_v6  ;;  %v2739_v18 = vmax.f32 %v1779_v58, %v2483_v4 }
 0x1b3   :  { %v2612_v15 = vmul.f32 0.01, %v2294_v7  ;;  %v2482_v16 = vmul.f32 0.01, %v1774_v12  ;;  %v2867_v19 = vmax.f32 %v2291_v59, %v2611_v5  ;;  %v2737_v22 = vmax.f32 %v1771_v0, %v2481_v10 }
 0x1b4   :  { %v2610_v17 = vmul.f32 0.01, %v2286_v13  ;;  %v2740_v20 = vmax.f32 %v1782_v6, %v2484_v14  ;;  %v2865_v23 = vmax.f32 %v2283_v1, %v2609_v11 }
 0x1b5   :  { %v2868_v21 = vmax.f32 %v2294_v7, %v2612_v15  ;;  %v2738_v24 = vmax.f32 %v1774_v12, %v2482_v16  ;;  %v5967_v26 = vpop.f32.mrb[108].mxu0  ;;  %v6095_v27 = vpop.f32.mrb[108].mxu1 }
 0x1b6   :  { %v2866_v25 = vmax.f32 %v2286_v13, %v2610_v17  ;;  %v5224_v28 = vpack.c.bf16 %v2740_v20, %v2739_v18  ;;  %v1795_v30 = vadd.f32 %v7030_v48, %v5967_v26  ;;  %v2307_v31 = vadd.f32 %v7030_v48, %v6095_v27  ;;  %v1786_v32 = vpop.f32.mrb[109].mxu0  ;;  %v2298_v33 = vpop.f32.mrb[109].mxu1 }
 0x1b7   :  { %v5544_v29 = vpack.c.bf16 %v2868_v21, %v2867_v19  ;;  %v5219_v34 = vpack.c.bf16 %v2738_v24, %v2737_v22  ;;  %v1787_v36 = vadd.f32 %v7030_v48, %v1786_v32  ;;  %v2299_v37 = vadd.f32 %v7030_v48, %v2298_v33  ;;  %v5968_v38 = vpop.f32.mrb[110].mxu0  ;;  %v6096_v39 = vpop.f32.mrb[110].mxu1 }
 0x1b8   :  { %v5539_v35 = vpack.c.bf16 %v2866_v25, %v2865_v23  ;;  %5648 = vst [vmem:[#allocation2 + $0x1a8] sm:$0xff] %v5224_v28   ;;  %v2487_v40 = vmul.f32 0.01, %v1795_v30  ;;  %v2615_v41 = vmul.f32 0.01, %v2307_v31  ;;  %v1798_v42 = vadd.f32 %v7030_v48, %v5968_v38  ;;  %v1789_v44 = vpop.f32.mrb[111].mxu0 }
 0x1b9   :  { %5712 = vst [vmem:[#allocation2 + $0x3a8] sm:$0xff] %v5544_v29   ;;  %v2310_v43 = vadd.f32 %v7030_v48, %v6096_v39  ;;  %v2301_v45 = vpop.f32.mrb[111].mxu1  ;;  %5647 = vst [vmem:[#allocation2 + $0x1a0] sm:$0xff] %v5219_v34   ;;  %v2485_v46 = vmul.f32 0.01, %v1787_v36  ;;  %v1790_v49 = vadd.f32 %v7030_v48, %v1789_v44 }
 0x1ba   :  { %5711 = vst [vmem:[#allocation2 + $0x3a0] sm:$0xff] %v5539_v35   ;;  %v2613_v47 = vmul.f32 0.01, %v2299_v37  ;;  %v2302_v50 = vadd.f32 %v7030_v48, %v2301_v45  ;;  %v2488_v51 = vmul.f32 0.01, %v1798_v42  ;;  %v2743_v55 = vmax.f32 %v1795_v30, %v2487_v40 }
 0x1bb   :  { %v2616_v52 = vmul.f32 0.01, %v2310_v43  ;;  %v2486_v53 = vmul.f32 0.01, %v1790_v49  ;;  %v2871_v56 = vmax.f32 %v2307_v31, %v2615_v41  ;;  %v2741_v59 = vmax.f32 %v1787_v36, %v2485_v46 }
 0x1bc   :  { %v2614_v54 = vmul.f32 0.01, %v2302_v50  ;;  %v2744_v57 = vmax.f32 %v1798_v42, %v2488_v51  ;;  %v2869_v60 = vmax.f32 %v2299_v37, %v2613_v47 }
 0x1bd   :  { %v2872_v58 = vmax.f32 %v2310_v43, %v2616_v52  ;;  %v2742_v61 = vmax.f32 %v1790_v49, %v2486_v53  ;;  %v5971_v63 = vpop.f32.mrb[112].mxu0  ;;  %v6099_v0 = vpop.f32.mrb[112].mxu1 }
 0x1be   :  { %v2870_v62 = vmax.f32 %v2302_v50, %v2614_v54  ;;  %v5234_v1 = vpack.c.bf16 %v2744_v57, %v2743_v55  ;;  %v1811_v3 = vadd.f32 %v7030_v48, %v5971_v63  ;;  %v2323_v4 = vadd.f32 %v7030_v48, %v6099_v0  ;;  %v1802_v5 = vpop.f32.mrb[113].mxu0  ;;  %v2314_v6 = vpop.f32.mrb[113].mxu1 }
 0x1bf   :  { %v5554_v2 = vpack.c.bf16 %v2872_v58, %v2871_v56  ;;  %v5229_v7 = vpack.c.bf16 %v2742_v61, %v2741_v59  ;;  %v1803_v9 = vadd.f32 %v7030_v48, %v1802_v5  ;;  %v2315_v10 = vadd.f32 %v7030_v48, %v2314_v6  ;;  %v5972_v11 = vpop.f32.mrb[114].mxu0  ;;  %v6100_v12 = vpop.f32.mrb[114].mxu1 }
 0x1c0   :  { %v5549_v8 = vpack.c.bf16 %v2870_v62, %v2869_v60  ;;  %5650 = vst [vmem:[#allocation2 + $0x1b8] sm:$0xff] %v5234_v1   ;;  %v2491_v13 = vmul.f32 0.01, %v1811_v3  ;;  %v2619_v14 = vmul.f32 0.01, %v2323_v4  ;;  %v1814_v15 = vadd.f32 %v7030_v48, %v5972_v11  ;;  %v1805_v17 = vpop.f32.mrb[115].mxu0 }
 0x1c1   :  { %5714 = vst [vmem:[#allocation2 + $0x3b8] sm:$0xff] %v5554_v2   ;;  %v2326_v16 = vadd.f32 %v7030_v48, %v6100_v12  ;;  %v2317_v18 = vpop.f32.mrb[115].mxu1  ;;  %5649 = vst [vmem:[#allocation2 + $0x1b0] sm:$0xff] %v5229_v7   ;;  %v2489_v19 = vmul.f32 0.01, %v1803_v9  ;;  %v1806_v21 = vadd.f32 %v7030_v48, %v1805_v17 }
 0x1c2   :  { %5713 = vst [vmem:[#allocation2 + $0x3b0] sm:$0xff] %v5549_v8   ;;  %v2617_v20 = vmul.f32 0.01, %v2315_v10  ;;  %v2318_v22 = vadd.f32 %v7030_v48, %v2317_v18  ;;  %v2492_v23 = vmul.f32 0.01, %v1814_v15  ;;  %v2747_v27 = vmax.f32 %v1811_v3, %v2491_v13 }
 0x1c3   :  { %v2620_v24 = vmul.f32 0.01, %v2326_v16  ;;  %v2490_v25 = vmul.f32 0.01, %v1806_v21  ;;  %v2875_v28 = vmax.f32 %v2323_v4, %v2619_v14  ;;  %v2745_v31 = vmax.f32 %v1803_v9, %v2489_v19 }
 0x1c4   :  { %v2618_v26 = vmul.f32 0.01, %v2318_v22  ;;  %v2748_v29 = vmax.f32 %v1814_v15, %v2492_v23  ;;  %v2873_v32 = vmax.f32 %v2315_v10, %v2617_v20 }
 0x1c5   :  { %v2876_v30 = vmax.f32 %v2326_v16, %v2620_v24  ;;  %v2746_v33 = vmax.f32 %v1806_v21, %v2490_v25  ;;  %v5975_v35 = vpop.f32.mrb[116].mxu0  ;;  %v6103_v36 = vpop.f32.mrb[116].mxu1 }
 0x1c6   :  { %v2874_v34 = vmax.f32 %v2318_v22, %v2618_v26  ;;  %v5244_v37 = vpack.c.bf16 %v2748_v29, %v2747_v27  ;;  %v1827_v39 = vadd.f32 %v7030_v48, %v5975_v35  ;;  %v2339_v40 = vadd.f32 %v7030_v48, %v6103_v36  ;;  %v1818_v41 = vpop.f32.mrb[117].mxu0  ;;  %v2330_v42 = vpop.f32.mrb[117].mxu1 }
 0x1c7   :  { %v5564_v38 = vpack.c.bf16 %v2876_v30, %v2875_v28  ;;  %v5239_v43 = vpack.c.bf16 %v2746_v33, %v2745_v31  ;;  %v1819_v45 = vadd.f32 %v7030_v48, %v1818_v41  ;;  %v2331_v46 = vadd.f32 %v7030_v48, %v2330_v42  ;;  %v5976_v47 = vpop.f32.mrb[118].mxu0  ;;  %v6104_v49 = vpop.f32.mrb[118].mxu1 }
 0x1c8   :  { %v5559_v44 = vpack.c.bf16 %v2874_v34, %v2873_v32  ;;  %5652 = vst [vmem:[#allocation2 + $0x1c8] sm:$0xff] %v5244_v37   ;;  %v2495_v50 = vmul.f32 0.01, %v1827_v39  ;;  %v2623_v51 = vmul.f32 0.01, %v2339_v40  ;;  %v1830_v52 = vadd.f32 %v7030_v48, %v5976_v47  ;;  %v1821_v54 = vpop.f32.mrb[119].mxu0 }
 0x1c9   :  { %5716 = vst [vmem:[#allocation2 + $0x3c8] sm:$0xff] %v5564_v38   ;;  %v2342_v53 = vadd.f32 %v7030_v48, %v6104_v49  ;;  %v2333_v55 = vpop.f32.mrb[119].mxu1  ;;  %5651 = vst [vmem:[#allocation2 + $0x1c0] sm:$0xff] %v5239_v43   ;;  %v2493_v56 = vmul.f32 0.01, %v1819_v45  ;;  %v1822_v58 = vadd.f32 %v7030_v48, %v1821_v54 }
 0x1ca   :  { %5715 = vst [vmem:[#allocation2 + $0x3c0] sm:$0xff] %v5559_v44   ;;  %v2621_v57 = vmul.f32 0.01, %v2331_v46  ;;  %v2334_v59 = vadd.f32 %v7030_v48, %v2333_v55  ;;  %v2496_v60 = vmul.f32 0.01, %v1830_v52  ;;  %v2751_v0 = vmax.f32 %v1827_v39, %v2495_v50 }
 0x1cb   :  { %v2624_v61 = vmul.f32 0.01, %v2342_v53  ;;  %v2494_v62 = vmul.f32 0.01, %v1822_v58  ;;  %v2879_v1 = vmax.f32 %v2339_v40, %v2623_v51  ;;  %v2749_v4 = vmax.f32 %v1819_v45, %v2493_v56 }
 0x1cc   :  { %v2622_v63 = vmul.f32 0.01, %v2334_v59  ;;  %v2752_v2 = vmax.f32 %v1830_v52, %v2496_v60  ;;  %v2877_v5 = vmax.f32 %v2331_v46, %v2621_v57 }
 0x1cd   :  { %v2880_v3 = vmax.f32 %v2342_v53, %v2624_v61  ;;  %v2750_v6 = vmax.f32 %v1822_v58, %v2494_v62  ;;  %v5979_v8 = vpop.f32.mrb[120].mxu0  ;;  %v6107_v9 = vpop.f32.mrb[120].mxu1 }
 0x1ce   :  { %v2878_v7 = vmax.f32 %v2334_v59, %v2622_v63  ;;  %v5254_v10 = vpack.c.bf16 %v2752_v2, %v2751_v0  ;;  %v1843_v12 = vadd.f32 %v7030_v48, %v5979_v8  ;;  %v2355_v13 = vadd.f32 %v7030_v48, %v6107_v9  ;;  %v1834_v14 = vpop.f32.mrb[121].mxu0  ;;  %v2346_v15 = vpop.f32.mrb[121].mxu1 }
 0x1cf   :  { %v5574_v11 = vpack.c.bf16 %v2880_v3, %v2879_v1  ;;  %v5249_v16 = vpack.c.bf16 %v2750_v6, %v2749_v4  ;;  %v1835_v18 = vadd.f32 %v7030_v48, %v1834_v14  ;;  %v2347_v19 = vadd.f32 %v7030_v48, %v2346_v15  ;;  %v5980_v20 = vpop.f32.mrb[122].mxu0  ;;  %v6108_v21 = vpop.f32.mrb[122].mxu1 }
 0x1d0   :  { %v5569_v17 = vpack.c.bf16 %v2878_v7, %v2877_v5  ;;  %5654 = vst [vmem:[#allocation2 + $0x1d8] sm:$0xff] %v5254_v10   ;;  %v2499_v22 = vmul.f32 0.01, %v1843_v12  ;;  %v2627_v23 = vmul.f32 0.01, %v2355_v13  ;;  %v1846_v24 = vadd.f32 %v7030_v48, %v5980_v20  ;;  %v1837_v26 = vpop.f32.mrb[123].mxu0 }
 0x1d1   :  { %5718 = vst [vmem:[#allocation2 + $0x3d8] sm:$0xff] %v5574_v11   ;;  %v2358_v25 = vadd.f32 %v7030_v48, %v6108_v21  ;;  %v2349_v27 = vpop.f32.mrb[123].mxu1  ;;  %5653 = vst [vmem:[#allocation2 + $0x1d0] sm:$0xff] %v5249_v16   ;;  %v2497_v28 = vmul.f32 0.01, %v1835_v18  ;;  %v1838_v30 = vadd.f32 %v7030_v48, %v1837_v26 }
 0x1d2   :  { %5717 = vst [vmem:[#allocation2 + $0x3d0] sm:$0xff] %v5569_v17   ;;  %v2625_v29 = vmul.f32 0.01, %v2347_v19  ;;  %v2350_v31 = vadd.f32 %v7030_v48, %v2349_v27  ;;  %v2500_v32 = vmul.f32 0.01, %v1846_v24  ;;  %v2755_v36 = vmax.f32 %v1843_v12, %v2499_v22 }
 0x1d3   :  { %v2628_v33 = vmul.f32 0.01, %v2358_v25  ;;  %v2498_v34 = vmul.f32 0.01, %v1838_v30  ;;  %v2883_v37 = vmax.f32 %v2355_v13, %v2627_v23  ;;  %v2753_v40 = vmax.f32 %v1835_v18, %v2497_v28 }
 0x1d4   :  { %v2626_v35 = vmul.f32 0.01, %v2350_v31  ;;  %v2756_v38 = vmax.f32 %v1846_v24, %v2500_v32  ;;  %v2881_v41 = vmax.f32 %v2347_v19, %v2625_v29 }
 0x1d5   :  { %v2884_v39 = vmax.f32 %v2358_v25, %v2628_v33  ;;  %v2754_v42 = vmax.f32 %v1838_v30, %v2498_v34  ;;  %v5983_v44 = vpop.f32.mrb[124].mxu0  ;;  %v6111_v45 = vpop.f32.mrb[124].mxu1 }
 0x1d6   :  { %v2882_v43 = vmax.f32 %v2350_v31, %v2626_v35  ;;  %v5264_v46 = vpack.c.bf16 %v2756_v38, %v2755_v36  ;;  %v1859_v49 = vadd.f32 %v7030_v48, %v5983_v44  ;;  %v2371_v50 = vadd.f32 %v7030_v48, %v6111_v45  ;;  %v1850_v51 = vpop.f32.mrb[125].mxu0  ;;  %v2362_v52 = vpop.f32.mrb[125].mxu1 }
 0x1d7   :  { %v5584_v47 = vpack.c.bf16 %v2884_v39, %v2883_v37  ;;  %v5259_v53 = vpack.c.bf16 %v2754_v42, %v2753_v40  ;;  %v1851_v55 = vadd.f32 %v7030_v48, %v1850_v51  ;;  %v2363_v56 = vadd.f32 %v7030_v48, %v2362_v52  ;;  %v5984_v57 = vpop.f32.mrb[126].mxu0  ;;  %v6112_v58 = vpop.f32.mrb[126].mxu1 }
 0x1d8   :  { %v5579_v54 = vpack.c.bf16 %v2882_v43, %v2881_v41  ;;  %5656 = vst [vmem:[#allocation2 + $0x1e8] sm:$0xff] %v5264_v46   ;;  %v2503_v59 = vmul.f32 0.01, %v1859_v49  ;;  %v2631_v60 = vmul.f32 0.01, %v2371_v50  ;;  %v1862_v61 = vadd.f32 %v7030_v48, %v5984_v57  ;;  %v1853_v63 = vpop.f32.mrb[127].mxu0 }
 0x1d9   :  { %5720 = vst [vmem:[#allocation2 + $0x3e8] sm:$0xff] %v5584_v47   ;;  %v2374_v62 = vadd.f32 %v7030_v48, %v6112_v58  ;;  %v2365_v0 = vpop.f32.mrb[127].mxu1  ;;  %5655 = vst [vmem:[#allocation2 + $0x1e0] sm:$0xff] %v5259_v53   ;;  %v2501_v1 = vmul.f32 0.01, %v1851_v55  ;;  %v1854_v3 = vadd.f32 %v7030_v48, %v1853_v63 }
 0x1da   :  { %5719 = vst [vmem:[#allocation2 + $0x3e0] sm:$0xff] %v5579_v54   ;;  %v2629_v2 = vmul.f32 0.01, %v2363_v56  ;;  %v2366_v4 = vadd.f32 %v7030_v48, %v2365_v0  ;;  %v2504_v5 = vmul.f32 0.01, %v1862_v61  ;;  %v2759_v9 = vmax.f32 %v1859_v49, %v2503_v59 }
 0x1db   :  { %v2632_v6 = vmul.f32 0.01, %v2374_v62  ;;  %v2502_v7 = vmul.f32 0.01, %v1854_v3  ;;  %v2887_v10 = vmax.f32 %v2371_v50, %v2631_v60  ;;  %v2757_v13 = vmax.f32 %v1851_v55, %v2501_v1 }
 0x1dc   :  { %v2630_v8 = vmul.f32 0.01, %v2366_v4  ;;  %v2760_v11 = vmax.f32 %v1862_v61, %v2504_v5  ;;  %v2885_v14 = vmax.f32 %v2363_v56, %v2629_v2 }
 0x1dd   :  { %v2888_v12 = vmax.f32 %v2374_v62, %v2632_v6  ;;  %v2758_v15 = vmax.f32 %v1854_v3, %v2502_v7 }
 0x1de   :  { %v2886_v16 = vmax.f32 %v2366_v4, %v2630_v8  ;;  %v5274_v17 = vpack.c.bf16 %v2760_v11, %v2759_v9 }
 0x1df   :  { %v5594_v18 = vpack.c.bf16 %v2888_v12, %v2887_v10  ;;  %v5269_v19 = vpack.c.bf16 %v2758_v15, %v2757_v13 }
 0x1e0   :  { %v5589_v20 = vpack.c.bf16 %v2886_v16, %v2885_v14  ;;  %5658 = vst [vmem:[#allocation2 + $0x1f8] sm:$0xff] %v5274_v17  }
 0x1e1   :  { %5722 = vst [vmem:[#allocation2 + $0x3f8] sm:$0xff] %v5594_v18   ;;  %5657 = vst [vmem:[#allocation2 + $0x1f0] sm:$0xff] %v5269_v19  }
 0x1e2   :  { %5721 = vst [vmem:[#allocation2 + $0x3f0] sm:$0xff] %v5589_v20  }
 0x1e3   :  { %6263 = shalt.err (!%p6260_p4)
}
 0x1e4   :  { %s6264_s28 = scalar_lea.hbm %s7103_s3, 16384 }
 0x1e5   :  { %p6265_p5 = scmp.ne.s32.totalorder %s7103_s3, %s6264_s28  ;;  %p6268_p6 = scmp.lt.u32.totalorder %s6264_s28, %s7103_s3 }
 0x1e7   :  { %p6270_p7 = pnand %p6268_p6, %p6265_p5 }
 0x1e9   :  { %6273 = shalt.err (!%p6270_p7)
}
 0x1ea   :  { %s6277_s6 = smov 64   ;;  %s6278_s7 = smov 4  }
 0x1eb   :  { %4180 = dma.vmem_to_hbm [thread:$0]  %s4175_s24, 16384, %s7103_s3, [#allocation3], %s6277_s6, %s6277_s6, %s6278_s7  }
 0x1ec   :  { %6274 = dma.done.wait [#allocation3], 16384  }
 0x1ed   :  { %6275 = vsyncadd [#allocation3], 4294950912 }
 0x1ee   :  { %4184 = vsyncpa [#allocation3], 1 }

</bundles_post_ra>
